<compile_context>
chip_gen: v7x
topology: tpu7x:2x2x1
jax: 0.10.0
libtpu: 0.0.40
codegen_flags: <defaults>
</compile_context>

<pallas_src>
import math

import numpy as np

import jax
import jax.numpy as jnp
from jax.experimental import pallas as pl
from jax.experimental.pallas import tpu as pltpu


# ----------------------------------------------------------------------------
# Pallas GEMM kernel: out = relu?( W(O,K) @ col(K,M) + bias [+ residual] )
#   - single K block (full extent), no accumulator scratch, no k grid axis
#   - M (spatial) on lanes -> lane-dense stores
# ----------------------------------------------------------------------------
def _round_up(x, m):
    return ((x + m - 1) // m) * m


def _make_mm_kernel(apply_relu, has_res):
    if has_res:
        def kernel(a_ref, b_ref, bias_ref, r_ref, o_ref):
            out = jnp.dot(a_ref[...], b_ref[...],
                          preferred_element_type=jnp.float32)
            out = out + bias_ref[...] + r_ref[...]
            if apply_relu:
                out = jnp.maximum(out, 0.0)
            o_ref[...] = out.astype(o_ref.dtype)
    else:
        def kernel(a_ref, b_ref, bias_ref, o_ref):
            out = jnp.dot(a_ref[...], b_ref[...],
                          preferred_element_type=jnp.float32)
            out = out + bias_ref[...]
            if apply_relu:
                out = jnp.maximum(out, 0.0)
            o_ref[...] = out.astype(o_ref.dtype)
    return kernel


_MM_KERNELS = {(r, h): _make_mm_kernel(r, h)
               for r in (False, True) for h in (False, True)}


def _pick_tn(Mp):
    """Largest lane-tile (multiple of 128, <= 1024) keeping >= 2 M-grid steps."""
    n128 = Mp // 128
    if n128 < 2:
        return 128
    best = 128
    for mult in range(1, n128 // 2 + 1):
        tn = 128 * mult
        if tn <= 1024 and Mp % tn == 0:
            best = tn
    return best


def matmul_bias_act(a, b, bias, relu=False, residual=None,
                    out_dtype=jnp.float32):
    """relu?(a @ b + bias[:, None] [+ residual]).

    a: (O, K) weights, b: (K, M) channel-major im2col activations,
    bias: (O,) f32, residual: optional (O, M) f32.  Output (O, M) out_dtype.
    """
    O, K = a.shape
    K2, M = b.shape
    assert K == K2

    a = a.astype(jnp.bfloat16)
    b = b.astype(jnp.bfloat16)
    bias = bias.astype(jnp.float32)

    # Tiny-M GEMMs (deep layers, 8x8 spatial and below): let XLA fuse them with
    # the surrounding elementwise glue instead of paying a pallas_call launch
    # plus masked partial lane stores.
    if M < 256:
        out = jnp.dot(a, b, preferred_element_type=jnp.float32) + bias[:, None]
        if residual is not None:
            out = out + residual.astype(jnp.float32)
        if relu:
            out = jnp.maximum(out, 0.0)
        return out.astype(out_dtype)

    # --- Pallas path (stem / layer1 / layer2 scale) -------------------------
    tm = min(_round_up(max(O, 1), 16), 256)       # O on sublanes (small)
    Op = _round_up(O, tm)
    Mp = _round_up(M, 128)
    tn = _pick_tn(Mp)                             # M on lanes, >= 2 grid steps

    if Op != O:
        a = jnp.pad(a, ((0, Op - O), (0, 0)))     # weights: constant under jit
        bias = jnp.pad(bias, (0, Op - O))
    if Mp != M:
        b = jnp.pad(b, ((0, 0), (0, Mp - M)))     # not triggered at these shapes
    bias2 = bias.reshape(Op, 1)

    has_res = residual is not None
    operands = [a, b, bias2]
    in_specs = [
        pl.BlockSpec((tm, K), lambda i, j: (i, 0)),   # full-extent K block
        pl.BlockSpec((K, tn), lambda i, j: (0, j)),
        pl.BlockSpec((tm, 1), lambda i, j: (i, 0)),
    ]
    if has_res:
        r = residual.astype(jnp.float32)
        if (Op != O) or (Mp != M):
            r = jnp.pad(r, ((0, Op - O), (0, Mp - M)))
        operands.append(r)
        in_specs.append(pl.BlockSpec((tm, tn), lambda i, j: (i, j)))

    out = pl.pallas_call(
        _MM_KERNELS[(bool(relu), has_res)],
        out_shape=jax.ShapeDtypeStruct((Op, Mp), out_dtype),
        grid_spec=pltpu.PrefetchScalarGridSpec(
            num_scalar_prefetch=0,
            grid=(Op // tm, Mp // tn),
            in_specs=in_specs,
            out_specs=pl.BlockSpec((tm, tn), lambda i, j: (i, j)),
        ),
        compiler_params=pltpu.CompilerParams(
            dimension_semantics=("parallel", "parallel")),
    )(*operands)

    if (Op, Mp) != (O, M):
        out = out[:O, :M]
    return out


# ----------------------------------------------------------------------------
# Conv (channel-major im2col GEMM) and elementwise glue
# ----------------------------------------------------------------------------
def conv2d(x, w, bias, stride=1, padding=0, relu=False, residual=None,
           out_dtype=jnp.float32):
    """x: (C, N, H, W), w: (O, C, kh, kw), bias: (O,) or None,
    residual: optional (O, N, Ho, Wo).  Returns (O, N, Ho, Wo)."""
    C, N, H, W = x.shape
    O, Ci, kh, kw = w.shape
    assert Ci == C
    Ho = (H + 2 * padding - kh) // stride + 1
    Wo = (W + 2 * padding - kw) // stride + 1
    M = N * Ho * Wo

    xb = x.astype(jnp.bfloat16)     # bf16 operands, f32 MXU accumulation
    if kh == 1 and kw == 1 and stride == 1 and padding == 0:
        colT = xb.reshape(C, M)                               # zero-copy im2col
        wm = w.reshape(O, C)
    else:
        xp = jnp.pad(xb, ((0, 0), (0, 0),
                          (padding, padding), (padding, padding)))
        taps = []
        for di in range(kh):
            for dj in range(kw):
                taps.append(xp[:, :, di:di + stride * Ho:stride,
                               dj:dj + stride * Wo:stride].reshape(C, M))
        colT = jnp.concatenate(taps, axis=0)                  # (kh*kw*C, M), no transpose
        wm = w.transpose(0, 2, 3, 1).reshape(O, kh * kw * C)  # tap-major to match

    if bias is None:
        bias = jnp.zeros((O,), jnp.float32)
    res2d = None if residual is None else residual.reshape(O, M)

    out = matmul_bias_act(wm, colT, bias, relu=relu, residual=res2d,
                          out_dtype=out_dtype)                # (O, M)
    return out.reshape(O, N, Ho, Wo)


def conv_apply(p, x, stride=1, padding=0, relu=False, residual=None,
               out_dtype=jnp.float32):
    return conv2d(x, p['w'], p['b'], stride=stride, padding=padding,
                  relu=relu, residual=residual, out_dtype=out_dtype)


relu = jax.nn.relu
sigmoid = jax.nn.sigmoid


def bn_relu(x, p):
    """Pre-norm BN (folded to scale/shift) + ReLU on channel-major tensors."""
    return relu(x * p['s'][:, None, None, None] + p['t'][:, None, None, None])


def avg_pool(x, k, s, p):
    # matches nn.AvgPool2d(count_include_pad=True); x is (C, N, H, W)
    summed = jax.lax.reduce_window(
        x.astype(jnp.float32), jnp.float32(0), jax.lax.add,
        window_dimensions=(1, 1, k, k), window_strides=(1, 1, s, s),
        padding=((0, 0), (0, 0), (p, p), (p, p)))
    return summed / float(k * k)


# Bilinear resize via tiny precomputed interpolation matrices (no gathers).
_INTERP_CACHE = {}


def _interp_matrix(out_size, in_size):
    key = (out_size, in_size)
    if key not in _INTERP_CACHE:
        src = (np.arange(out_size, dtype=np.float64) + 0.5) * (in_size / out_size) - 0.5
        src = np.clip(src, 0.0, in_size - 1)
        i0 = np.floor(src).astype(np.int64)
        i1 = np.minimum(i0 + 1, in_size - 1)
        w = src - i0
        mat = np.zeros((out_size, in_size), np.float64)
        mat[np.arange(out_size), i0] += 1.0 - w
        mat[np.arange(out_size), i1] += w
        _INTERP_CACHE[key] = jnp.asarray(mat, jnp.float32)
    return _INTERP_CACHE[key]


def bilinear(x, oh, ow):
    # F.interpolate(mode='bilinear', align_corners=False); x is (C, N, H, W)
    C, N, H, W = x.shape
    if H == oh and W == ow:
        return x
    My = _interp_matrix(oh, H)
    Mx = _interp_matrix(ow, W)
    x = x.astype(jnp.float32)
    y = jnp.einsum('cnhw,oh->cnow', x, My)
    return jnp.einsum('cnow,pw->cnop', y, Mx)


# ----------------------------------------------------------------------------
# Parameter initialization with BatchNorm folding (inference mode)
# ----------------------------------------------------------------------------
class KeyGen:
    def __init__(self, seed=0):
        self._key = jax.random.PRNGKey(seed)
        self._i = 0

    def __call__(self):
        self._i += 1
        return jax.random.fold_in(self._key, self._i)


def _init_conv_raw(rng, cin, cout, k, bias=False, groups=1):
    fan_out = cout * k * k  # kaiming_normal_(mode='fan_out', relu)
    std = math.sqrt(2.0 / fan_out)
    w = std * jax.random.normal(rng(), (cout, cin // groups, k, k), jnp.float32)
    b = None
    if bias:
        fan_in = (cin // groups) * k * k
        bound = 1.0 / math.sqrt(fan_in)
        b = jax.random.uniform(rng(), (cout,), jnp.float32, -bound, bound)
    return w, b


def _expand_grouped(w, groups):
    """(O, Cin/g, kh, kw) grouped weight -> dense block-diagonal (O, Cin, kh, kw)."""
    O, Ig, kh, kw = w.shape
    Og = O // groups
    full = jnp.zeros((O, Ig * groups, kh, kw), w.dtype)
    for g in range(groups):
        full = full.at[g * Og:(g + 1) * Og, g * Ig:(g + 1) * Ig].set(
            w[g * Og:(g + 1) * Og])
    return full


def _init_bn_stats(c):
    return {'g': jnp.ones((c,), jnp.float32), 'b': jnp.zeros((c,), jnp.float32),
            'm': jnp.zeros((c,), jnp.float32), 'v': jnp.ones((c,), jnp.float32)}


def _fold_conv_bn(w, b, bn, eps=1e-5):
    s = bn['g'] / jnp.sqrt(bn['v'] + eps)
    wf = w * s[:, None, None, None]
    bf = (b if b is not None else 0.0) * s + bn['b'] - bn['m'] * s
    return {'w': wf, 'b': bf}


def _bn_affine(bn, eps=1e-5):
    s = bn['g'] / jnp.sqrt(bn['v'] + eps)
    return {'s': s, 't': bn['b'] - bn['m'] * s}


def init_conv_bn(rng, cin, cout, k, bias=False, groups=1):
    """Conv followed by BN -> folded into one fused conv {'w','b'}."""
    w, b = _init_conv_raw(rng, cin, cout, k, bias, groups)
    if groups > 1:
        w = _expand_grouped(w, groups)
    return _fold_conv_bn(w, b, _init_bn_stats(cout))


def init_conv_plain(rng, cin, cout, k, bias=False, groups=1):
    """Conv with no trailing BN (pre-norm blocks)."""
    w, b = _init_conv_raw(rng, cin, cout, k, bias, groups)
    if groups > 1:
        w = _expand_grouped(w, groups)
    if b is None:
        b = jnp.zeros((cout,), jnp.float32)
    return {'w': w, 'b': b}


def init_bn_pre(c):
    return _bn_affine(_init_bn_stats(c))


# ---- residual blocks (residual add + trailing ReLU fused into last GEMM) ----
def init_basic(rng, cin, cout, downsample):
    p = {'cb1': init_conv_bn(rng, cin, cout, 3),
         'cb2': init_conv_bn(rng, cout, cout, 3)}
    if downsample:
        p['down'] = init_conv_bn(rng, cin, cout, 1)
    return p


def basic_block(p, x, stride=1, no_relu=False):
    res = conv_apply(p['down'], x, stride=stride) if 'down' in p else x
    out = conv_apply(p['cb1'], x, stride=stride, padding=1, relu=True,
                     out_dtype=jnp.bfloat16)
    return conv_apply(p['cb2'], out, padding=1, residual=res,
                      relu=not no_relu)


def init_bottleneck(rng, cin, planes, downsample):
    p = {'cb1': init_conv_bn(rng, cin, planes, 1),
         'cb2': init_conv_bn(rng, planes, planes, 3),
         'cb3': init_conv_bn(rng, planes, planes * 2, 1)}
    if downsample:
        p['down'] = init_conv_bn(rng, cin, planes * 2, 1)
    return p


def bottleneck(p, x, stride=1, no_relu=True):
    res = conv_apply(p['down'], x, stride=stride) if 'down' in p else x
    out = conv_apply(p['cb1'], x, relu=True, out_dtype=jnp.bfloat16)
    out = conv_apply(p['cb2'], out, stride=stride, padding=1, relu=True,
                     out_dtype=jnp.bfloat16)
    return conv_apply(p['cb3'], out, residual=res, relu=not no_relu)


def init_layer_basic(rng, cin, planes, blocks, stride=1):
    params, specs = [], []
    downsample = (stride != 1 or cin != planes)
    params.append(init_basic(rng, cin, planes, downsample))
    specs.append((stride, False))               # BasicBlock default no_relu=False
    for i in range(1, blocks):
        params.append(init_basic(rng, planes, planes, False))
        specs.append((1, i == blocks - 1))
    return {'params': params, 'specs': specs}


def layer_basic(layer, x):
    for p, (stride, no_relu) in zip(layer['params'], layer['specs']):
        x = basic_block(p, x, stride, no_relu)
    return x


def init_layer_bottle(rng, cin, planes, blocks, stride=1):
    params, specs = [], []
    downsample = (stride != 1 or cin != planes * 2)
    params.append(init_bottleneck(rng, cin, planes, downsample))
    specs.append((stride, True))                # Bottleneck default no_relu=True
    for i in range(1, blocks):
        params.append(init_bottleneck(rng, planes * 2, planes, False))
        specs.append((1, i == blocks - 1))
    return {'params': params, 'specs': specs}


def layer_bottle(layer, x):
    for p, (stride, no_relu) in zip(layer['params'], layer['specs']):
        x = bottleneck(p, x, stride, no_relu)
    return x


# ---- PagFM / PAPPM / Light_Bag / segmenthead (all channel-major) -----------
def init_pagfm(rng, cin, mid):
    return {'f_x': init_conv_bn(rng, cin, mid, 1),
            'f_y': init_conv_bn(rng, cin, mid, 1)}


def pagfm(p, x, y):
    # with_channel=False, after_relu=False; sigmoid similarity kept in f32
    C, N, H, W = x.shape
    y_q = bilinear(conv_apply(p['f_y'], y), H, W)
    x_k = conv_apply(p['f_x'], x)
    sim = sigmoid(jnp.sum(x_k * y_q, axis=0, keepdims=True))
    y_up = bilinear(y, H, W)
    return (1 - sim) * x + sim * y_up


def init_pappm(rng, inp, bp, outp):
    p = {}
    for name in ('scale1', 'scale2', 'scale3', 'scale4', 'scale0'):
        p[name] = {'bn': init_bn_pre(inp), 'conv': init_conv_plain(rng, inp, bp, 1)}
    p['scale_process'] = {'bn': init_bn_pre(bp * 4),
                          'conv': init_conv_plain(rng, bp * 4, bp * 4, 3, groups=4)}
    p['compression'] = {'bn': init_bn_pre(bp * 5),
                        'conv': init_conv_plain(rng, bp * 5, outp, 1)}
    p['shortcut'] = {'bn': init_bn_pre(inp), 'conv': init_conv_plain(rng, inp, outp, 1)}
    return p


def pappm(p, x):
    C, N, H, W = x.shape

    def branch(pp, z):
        return conv_apply(pp['conv'], bn_relu(z, pp['bn']))

    x_ = branch(p['scale0'], x)
    s1 = branch(p['scale1'], avg_pool(x, 5, 2, 2))
    s2 = branch(p['scale2'], avg_pool(x, 9, 4, 4))
    s3 = branch(p['scale3'], avg_pool(x, 17, 8, 8))
    s4 = branch(p['scale4'], jnp.mean(x, axis=(2, 3), keepdims=True))
    scale_list = [bilinear(s, H, W) + x_ for s in (s1, s2, s3, s4)]
    cat4 = jnp.concatenate(scale_list, axis=0)
    scale_out = conv_apply(p['scale_process']['conv'],
                           bn_relu(cat4, p['scale_process']['bn']), padding=1)
    cat5 = jnp.concatenate([x_, scale_out], axis=0)
    out = conv_apply(p['compression']['conv'], bn_relu(cat5, p['compression']['bn']))
    out = out + conv_apply(p['shortcut']['conv'], bn_relu(x, p['shortcut']['bn']))
    return out


def init_light_bag(rng, cin, cout):
    return {'conv_p': init_conv_bn(rng, cin, cout, 1),
            'conv_i': init_conv_bn(rng, cin, cout, 1)}


def light_bag(pr, p, i, d):
    att = sigmoid(d)
    p_add = conv_apply(pr['conv_p'], (1 - att) * i + p)
    i_add = conv_apply(pr['conv_i'], i + att * p)
    return p_add + i_add


def init_seghead(rng, inp, inter, outp):
    return {'bn1': init_bn_pre(inp), 'conv1': init_conv_plain(rng, inp, inter, 3),
            'bn2': init_bn_pre(inter),
            'conv2': init_conv_plain(rng, inter, outp, 1, bias=True)}


def seghead(p, x):
    x = conv_apply(p['conv1'], bn_relu(x, p['bn1']), padding=1,
                   out_dtype=jnp.bfloat16)
    return conv_apply(p['conv2'], bn_relu(x, p['bn2']))  # scale_factor=None


# ----------------------------------------------------------------------------
# PIDNet (m=2, n=3, augment=True) — parameters + forward
# ----------------------------------------------------------------------------
def init_pidnet(rng, planes=8, ppm_planes=12, head_planes=16, num_classes=4):
    P = {}
    P['conv1'] = {'c1': init_conv_bn(rng, 3, planes, 3, bias=True),
                  'c2': init_conv_bn(rng, planes, planes, 3, bias=True)}
    P['layer1'] = init_layer_basic(rng, planes, planes, 2)
    P['layer2'] = init_layer_basic(rng, planes, planes * 2, 2, stride=2)
    P['layer3'] = init_layer_basic(rng, planes * 2, planes * 4, 3, stride=2)
    P['layer4'] = init_layer_basic(rng, planes * 4, planes * 8, 3, stride=2)
    P['layer5'] = init_layer_bottle(rng, planes * 8, planes * 8, 2, stride=2)
    P['compression3'] = init_conv_bn(rng, planes * 4, planes * 2, 1)
    P['compression4'] = init_conv_bn(rng, planes * 8, planes * 2, 1)
    P['pag3'] = init_pagfm(rng, planes * 2, planes)
    P['pag4'] = init_pagfm(rng, planes * 2, planes)
    P['layer3_'] = init_layer_basic(rng, planes * 2, planes * 2, 2)
    P['layer4_'] = init_layer_basic(rng, planes * 2, planes * 2, 2)
    P['layer5_'] = init_layer_bottle(rng, planes * 2, planes * 2, 1)
    # m == 2 branch
    P['layer3_d'] = init_basic(rng, planes * 2, planes, downsample=True)
    P['layer4_d'] = init_layer_bottle(rng, planes, planes, 1)
    P['diff3'] = init_conv_bn(rng, planes * 4, planes, 3)
    P['diff4'] = init_conv_bn(rng, planes * 8, planes * 2, 3)
    P['spp'] = init_pappm(rng, planes * 16, ppm_planes, planes * 4)
    P['dfm'] = init_light_bag(rng, planes * 4, planes * 4)
    P['layer5_d'] = init_layer_bottle(rng, planes * 2, planes * 2, 1)
    P['seghead_p'] = init_seghead(rng, planes * 2, head_planes, num_classes)
    P['seghead_d'] = init_seghead(rng, planes * 2, planes, 1)
    P['final_layer'] = init_seghead(rng, planes * 4, head_planes, num_classes)
    return P


def pidnet_forward(P, x):
    H, W = x.shape[-2], x.shape[-1]
    ho, wo = H // 8, W // 8

    # channel-major internal layout (C, N, H, W)
    x = jnp.transpose(x, (1, 0, 2, 3))

    # stem (conv+BN+ReLU fused into the GEMM epilogue)
    x = conv_apply(P['conv1']['c1'], x, stride=2, padding=1, relu=True,
                   out_dtype=jnp.bfloat16)
    x = conv_apply(P['conv1']['c2'], x, stride=2, padding=1, relu=True)

    x = layer_basic(P['layer1'], x)
    x = relu(layer_basic(P['layer2'], relu(x)))

    x_ = layer_basic(P['layer3_'], x)
    x_d = basic_block(P['layer3_d'], x, stride=1, no_relu=True)
    x = relu(layer_basic(P['layer3'], x))

    comp3 = conv_apply(P['compression3'], x)
    x_ = pagfm(P['pag3'], x_, comp3)
    d3 = conv_apply(P['diff3'], x, padding=1)
    x_d = x_d + bilinear(d3, ho, wo)
    temp_p = x_

    x = relu(layer_basic(P['layer4'], x))
    x_ = layer_basic(P['layer4_'], relu(x_))
    x_d = layer_bottle(P['layer4_d'], relu(x_d))

    comp4 = conv_apply(P['compression4'], x)
    x_ = pagfm(P['pag4'], x_, comp4)
    d4 = conv_apply(P['diff4'], x, padding=1)
    x_d = x_d + bilinear(d4, ho, wo)
    temp_d = x_d

    x_ = layer_bottle(P['layer5_'], relu(x_))
    x_d = layer_bottle(P['layer5_d'], relu(x_d))
    x = bilinear(pappm(P['spp'], layer_bottle(P['layer5'], x)), ho, wo)

    x_ = seghead(P['final_layer'], light_bag(P['dfm'], x_, x, x_d))
    x_extra_p = seghead(P['seghead_p'], temp_p)
    x_extra_d = seghead(P['seghead_d'], temp_d)

    # back to (N, C, H, W)
    return [jnp.transpose(o, (1, 0, 2, 3)) for o in (x_extra_p, x_, x_extra_d)]


# ----------------------------------------------------------------------------
if __name__ == "__main__":
    rng = KeyGen(0)
    params = init_pidnet(rng, planes=8, ppm_planes=12, head_planes=16,
                         num_classes=4)

    x = jax.random.normal(jax.random.PRNGKey(0), (2, 3, 64, 64), jnp.float32)

    # Close over params so layer specs (Python ints/bools) stay static under jit
    # and weight reshape/cast/pad constant-fold at compile time.
    fwd = jax.jit(lambda inp: pidnet_forward(params, inp))
    outs = fwd(x)
    for o in outs:
        jax.block_until_ready(o)

    # sanity: [x_extra_p, x_, x_extra_d] shapes at H/8, W/8
    assert outs[0].shape == (2, 4, 8, 8)
    assert outs[1].shape == (2, 4, 8, 8)
    assert outs[2].shape == (2, 1, 8, 8)
    print("KERNEL_OK")
</pallas_src>

<mosaic_0001>
module attributes {stable_mosaic.version = 11 : i64} {
  func.func @kernel(%arg0: i32, %arg1: i32, %arg2: memref<16x27xbf16, #tpu.memory_space<vmem>>, %arg3: memref<27x1024xbf16, #tpu.memory_space<vmem>>, %arg4: memref<16x1xf32, #tpu.memory_space<vmem>>, %arg5: memref<16x1024xbf16, #tpu.memory_space<vmem>>) attributes {dimension_semantics = [#tpu.dimension_semantics<parallel>, #tpu.dimension_semantics<parallel>], iteration_bounds = array<i64: 1, 2>, scalar_prefetch = 0 : i64, scratch_operands = 0 : i64, tpu.core_type = #tpu.core_type<tc>, window_params = [{transform_indices = @transform_0, window_bounds = array<i64: 16, 27>}, {transform_indices = @transform_1, window_bounds = array<i64: 27, 1024>}, {transform_indices = @transform_2, window_bounds = array<i64: 16, 1>}, {transform_indices = @transform_3, window_bounds = array<i64: 16, 1024>}]} {
    %c0 = arith.constant 0 : index
    %c0_0 = arith.constant 0 : index
    %0 = vector.load %arg2[%c0, %c0_0] : memref<16x27xbf16, #tpu.memory_space<vmem>>, vector<16x27xbf16>
    %c0_1 = arith.constant 0 : index
    %c0_2 = arith.constant 0 : index
    %1 = vector.load %arg3[%c0_1, %c0_2] : memref<27x1024xbf16, #tpu.memory_space<vmem>>, vector<27x1024xbf16>
    %cst = arith.constant dense<0.000000e+00> : vector<16x1024xf32>
    %2 = tpu.matmul %0, %1, %cst {dimension_numbers = #tpu.dot_dimension_numbers<[1], [0], [0], [1], [0, 0, 1, 1], [], []>} : vector<16x27xbf16>, vector<27x1024xbf16>, vector<16x1024xf32> -> vector<16x1024xf32>
    %c0_3 = arith.constant 0 : index
    %c0_4 = arith.constant 0 : index
    %3 = vector.load %arg4[%c0_3, %c0_4] : memref<16x1xf32, #tpu.memory_space<vmem>>, vector<16x1xf32>
    %4 = vector.broadcast %3 : vector<16x1xf32> to vector<16x1024xf32>
    %5 = arith.addf %2, %4 : vector<16x1024xf32>
    %cst_5 = arith.constant 0.000000e+00 : f32
    %6 = vector.broadcast %cst_5 : f32 to vector<16x1024xf32>
    %7 = arith.maximumf %5, %6 : vector<16x1024xf32>
    %8 = arith.truncf %7 : vector<16x1024xf32> to vector<16x1024xbf16>
    %c0_6 = arith.constant 0 : index
    %c0_7 = arith.constant 0 : index
    %9 = vector.load %arg5[%c0_6, %c0_7] : memref<16x1024xbf16, #tpu.memory_space<vmem>>, vector<16x1024xbf16>
    tpu.vector_store %arg5[%c0_6, %c0_7], %8 {strides = array<i32>} : memref<16x1024xbf16, #tpu.memory_space<vmem>>, vector<16x1024xbf16>,
    return
  }
  func.func @transform_0(%arg0: i32, %arg1: i32) -> (i32, i32) {
    %c0_i32 = arith.constant 0 : i32
    %c0_i32_0 = arith.constant 0 : i32
    return %arg0, %c0_i32 : i32, i32
  }
  func.func @transform_1(%arg0: i32, %arg1: i32) -> (i32, i32) {
    %c0_i32 = arith.constant 0 : i32
    %c0_i32_0 = arith.constant 0 : i32
    return %c0_i32, %arg1 : i32, i32
  }
  func.func @transform_2(%arg0: i32, %arg1: i32) -> (i32, i32) {
    %c0_i32 = arith.constant 0 : i32
    %c0_i32_0 = arith.constant 0 : i32
    return %arg0, %c0_i32 : i32, i32
  }
  func.func @transform_3(%arg0: i32, %arg1: i32) -> (i32, i32) {
    %c0_i32 = arith.constant 0 : i32
    return %arg0, %arg1 : i32, i32
  }
}

module attributes {stable_mosaic.version = 11 : i64} {
  func.func @kernel(%arg0: i32, %arg1: i32, %arg2: memref<16x72xbf16, #tpu.memory_space<vmem>>, %arg3: memref<72x256xbf16, #tpu.memory_space<vmem>>, %arg4: memref<16x1xf32, #tpu.memory_space<vmem>>, %arg5: memref<16x256xf32, #tpu.memory_space<vmem>>) attributes {dimension_semantics = [#tpu.dimension_semantics<parallel>, #tpu.dimension_semantics<parallel>], iteration_bounds = array<i64: 1, 2>, scalar_prefetch = 0 : i64, scratch_operands = 0 : i64, tpu.core_type = #tpu.core_type<tc>, window_params = [{transform_indices = @transform_0, window_bounds = array<i64: 16, 72>}, {transform_indices = @transform_1, window_bounds = array<i64: 72, 256>}, {transform_indices = @transform_2, window_bounds = array<i64: 16, 1>}, {transform_indices = @transform_3, window_bounds = array<i64: 16, 256>}]} {
    %c0 = arith.constant 0 : index
    %c0_0 = arith.constant 0 : index
    %0 = vector.load %arg2[%c0, %c0_0] : memref<16x72xbf16, #tpu.memory_space<vmem>>, vector<16x72xbf16>
    %c0_1 = arith.constant 0 : index
    %c0_2 = arith.constant 0 : index
    %1 = vector.load %arg3[%c0_1, %c0_2] : memref<72x256xbf16, #tpu.memory_space<vmem>>, vector<72x256xbf16>
    %cst = arith.constant dense<0.000000e+00> : vector<16x256xf32>
    %2 = tpu.matmul %0, %1, %cst {dimension_numbers = #tpu.dot_dimension_numbers<[1], [0], [0], [1], [0, 0, 1, 1], [], []>} : vector<16x72xbf16>, vector<72x256xbf16>, vector<16x256xf32> -> vector<16x256xf32>
    %c0_3 = arith.constant 0 : index
    %c0_4 = arith.constant 0 : index
    %3 = vector.load %arg4[%c0_3, %c0_4] : memref<16x1xf32, #tpu.memory_space<vmem>>, vector<16x1xf32>
    %4 = vector.broadcast %3 : vector<16x1xf32> to vector<16x256xf32>
    %5 = arith.addf %2, %4 : vector<16x256xf32>
    %cst_5 = arith.constant 0.000000e+00 : f32
    %6 = vector.broadcast %cst_5 : f32 to vector<16x256xf32>
    %7 = arith.maximumf %5, %6 : vector<16x256xf32>
    %c0_6 = arith.constant 0 : index
    %c0_7 = arith.constant 0 : index
    %8 = vector.load %arg5[%c0_6, %c0_7] : memref<16x256xf32, #tpu.memory_space<vmem>>, vector<16x256xf32>
    tpu.vector_store %arg5[%c0_6, %c0_7], %7 {strides = array<i32>} : memref<16x256xf32, #tpu.memory_space<vmem>>, vector<16x256xf32>,
    return
  }
  func.func @transform_0(%arg0: i32, %arg1: i32) -> (i32, i32) {
    %c0_i32 = arith.constant 0 : i32
    %c0_i32_0 = arith.constant 0 : i32
    return %arg0, %c0_i32 : i32, i32
  }
  func.func @transform_1(%arg0: i32, %arg1: i32) -> (i32, i32) {
    %c0_i32 = arith.constant 0 : i32
    %c0_i32_0 = arith.constant 0 : i32
    return %c0_i32, %arg1 : i32, i32
  }
  func.func @transform_2(%arg0: i32, %arg1: i32) -> (i32, i32) {
    %c0_i32 = arith.constant 0 : i32
    %c0_i32_0 = arith.constant 0 : i32
    return %arg0, %c0_i32 : i32, i32
  }
  func.func @transform_3(%arg0: i32, %arg1: i32) -> (i32, i32) {
    %c0_i32 = arith.constant 0 : i32
    return %arg0, %arg1 : i32, i32
  }
}

module attributes {stable_mosaic.version = 11 : i64} {
  func.func @kernel(%arg0: i32, %arg1: i32, %arg2: memref<16x72xbf16, #tpu.memory_space<vmem>>, %arg3: memref<72x256xbf16, #tpu.memory_space<vmem>>, %arg4: memref<16x1xf32, #tpu.memory_space<vmem>>, %arg5: memref<16x256xbf16, #tpu.memory_space<vmem>>) attributes {dimension_semantics = [#tpu.dimension_semantics<parallel>, #tpu.dimension_semantics<parallel>], iteration_bounds = array<i64: 1, 2>, scalar_prefetch = 0 : i64, scratch_operands = 0 : i64, tpu.core_type = #tpu.core_type<tc>, window_params = [{transform_indices = @transform_0, window_bounds = array<i64: 16, 72>}, {transform_indices = @transform_1, window_bounds = array<i64: 72, 256>}, {transform_indices = @transform_2, window_bounds = array<i64: 16, 1>}, {transform_indices = @transform_3, window_bounds = array<i64: 16, 256>}]} {
    %c0 = arith.constant 0 : index
    %c0_0 = arith.constant 0 : index
    %0 = vector.load %arg2[%c0, %c0_0] : memref<16x72xbf16, #tpu.memory_space<vmem>>, vector<16x72xbf16>
    %c0_1 = arith.constant 0 : index
    %c0_2 = arith.constant 0 : index
    %1 = vector.load %arg3[%c0_1, %c0_2] : memref<72x256xbf16, #tpu.memory_space<vmem>>, vector<72x256xbf16>
    %cst = arith.constant dense<0.000000e+00> : vector<16x256xf32>
    %2 = tpu.matmul %0, %1, %cst {dimension_numbers = #tpu.dot_dimension_numbers<[1], [0], [0], [1], [0, 0, 1, 1], [], []>} : vector<16x72xbf16>, vector<72x256xbf16>, vector<16x256xf32> -> vector<16x256xf32>
    %c0_3 = arith.constant 0 : index
    %c0_4 = arith.constant 0 : index
    %3 = vector.load %arg4[%c0_3, %c0_4] : memref<16x1xf32, #tpu.memory_space<vmem>>, vector<16x1xf32>
    %4 = vector.broadcast %3 : vector<16x1xf32> to vector<16x256xf32>
    %5 = arith.addf %2, %4 : vector<16x256xf32>
    %cst_5 = arith.constant 0.000000e+00 : f32
    %6 = vector.broadcast %cst_5 : f32 to vector<16x256xf32>
    %7 = arith.maximumf %5, %6 : vector<16x256xf32>
    %8 = arith.truncf %7 : vector<16x256xf32> to vector<16x256xbf16>
    %c0_6 = arith.constant 0 : index
    %c0_7 = arith.constant 0 : index
    %9 = vector.load %arg5[%c0_6, %c0_7] : memref<16x256xbf16, #tpu.memory_space<vmem>>, vector<16x256xbf16>
    tpu.vector_store %arg5[%c0_6, %c0_7], %8 {strides = array<i32>} : memref<16x256xbf16, #tpu.memory_space<vmem>>, vector<16x256xbf16>,
    return
  }
  func.func @transform_0(%arg0: i32, %arg1: i32) -> (i32, i32) {
    %c0_i32 = arith.constant 0 : i32
    %c0_i32_0 = arith.constant 0 : i32
    return %arg0, %c0_i32 : i32, i32
  }
  func.func @transform_1(%arg0: i32, %arg1: i32) -> (i32, i32) {
    %c0_i32 = arith.constant 0 : i32
    %c0_i32_0 = arith.constant 0 : i32
    return %c0_i32, %arg1 : i32, i32
  }
  func.func @transform_2(%arg0: i32, %arg1: i32) -> (i32, i32) {
    %c0_i32 = arith.constant 0 : i32
    %c0_i32_0 = arith.constant 0 : i32
    return %arg0, %c0_i32 : i32, i32
  }
  func.func @transform_3(%arg0: i32, %arg1: i32) -> (i32, i32) {
    %c0_i32 = arith.constant 0 : i32
    return %arg0, %arg1 : i32, i32
  }
}

module attributes {stable_mosaic.version = 11 : i64} {
  func.func @kernel(%arg0: i32, %arg1: i32, %arg2: memref<16x72xbf16, #tpu.memory_space<vmem>>, %arg3: memref<72x256xbf16, #tpu.memory_space<vmem>>, %arg4: memref<16x1xf32, #tpu.memory_space<vmem>>, %arg5: memref<16x256xf32, #tpu.memory_space<vmem>>, %arg6: memref<16x256xf32, #tpu.memory_space<vmem>>) attributes {dimension_semantics = [#tpu.dimension_semantics<parallel>, #tpu.dimension_semantics<parallel>], iteration_bounds = array<i64: 1, 2>, scalar_prefetch = 0 : i64, scratch_operands = 0 : i64, tpu.core_type = #tpu.core_type<tc>, window_params = [{transform_indices = @transform_0, window_bounds = array<i64: 16, 72>}, {transform_indices = @transform_1, window_bounds = array<i64: 72, 256>}, {transform_indices = @transform_2, window_bounds = array<i64: 16, 1>}, {transform_indices = @transform_3, window_bounds = array<i64: 16, 256>}, {transform_indices = @transform_4, window_bounds = array<i64: 16, 256>}]} {
    %c0 = arith.constant 0 : index
    %c0_0 = arith.constant 0 : index
    %0 = vector.load %arg2[%c0, %c0_0] : memref<16x72xbf16, #tpu.memory_space<vmem>>, vector<16x72xbf16>
    %c0_1 = arith.constant 0 : index
    %c0_2 = arith.constant 0 : index
    %1 = vector.load %arg3[%c0_1, %c0_2] : memref<72x256xbf16, #tpu.memory_space<vmem>>, vector<72x256xbf16>
    %cst = arith.constant dense<0.000000e+00> : vector<16x256xf32>
    %2 = tpu.matmul %0, %1, %cst {dimension_numbers = #tpu.dot_dimension_numbers<[1], [0], [0], [1], [0, 0, 1, 1], [], []>} : vector<16x72xbf16>, vector<72x256xbf16>, vector<16x256xf32> -> vector<16x256xf32>
    %c0_3 = arith.constant 0 : index
    %c0_4 = arith.constant 0 : index
    %3 = vector.load %arg4[%c0_3, %c0_4] : memref<16x1xf32, #tpu.memory_space<vmem>>, vector<16x1xf32>
    %4 = vector.broadcast %3 : vector<16x1xf32> to vector<16x256xf32>
    %5 = arith.addf %2, %4 : vector<16x256xf32>
    %c0_5 = arith.constant 0 : index
    %c0_6 = arith.constant 0 : index
    %6 = vector.load %arg5[%c0_5, %c0_6] : memref<16x256xf32, #tpu.memory_space<vmem>>, vector<16x256xf32>
    %7 = arith.addf %5, %6 : vector<16x256xf32>
    %cst_7 = arith.constant 0.000000e+00 : f32
    %8 = vector.broadcast %cst_7 : f32 to vector<16x256xf32>
    %9 = arith.maximumf %7, %8 : vector<16x256xf32>
    %c0_8 = arith.constant 0 : index
    %c0_9 = arith.constant 0 : index
    %10 = vector.load %arg6[%c0_8, %c0_9] : memref<16x256xf32, #tpu.memory_space<vmem>>, vector<16x256xf32>
    tpu.vector_store %arg6[%c0_8, %c0_9], %9 {strides = array<i32>} : memref<16x256xf32, #tpu.memory_space<vmem>>, vector<16x256xf32>,
    return
  }
  func.func @transform_0(%arg0: i32, %arg1: i32) -> (i32, i32) {
    %c0_i32 = arith.constant 0 : i32
    %c0_i32_0 = arith.constant 0 : i32
    return %arg0, %c0_i32 : i32, i32
  }
  func.func @transform_1(%arg0: i32, %arg1: i32) -> (i32, i32) {
    %c0_i32 = arith.constant 0 : i32
    %c0_i32_0 = arith.constant 0 : i32
    return %c0_i32, %arg1 : i32, i32
  }
  func.func @transform_2(%arg0: i32, %arg1: i32) -> (i32, i32) {
    %c0_i32 = arith.constant 0 : i32
    %c0_i32_0 = arith.constant 0 : i32
    return %arg0, %c0_i32 : i32, i32
  }
  func.func @transform_3(%arg0: i32, %arg1: i32) -> (i32, i32) {
    %c0_i32 = arith.constant 0 : i32
    return %arg0, %arg1 : i32, i32
  }
  func.func @transform_4(%arg0: i32, %arg1: i32) -> (i32, i32) {
    %c0_i32 = arith.constant 0 : i32
    return %arg0, %arg1 : i32, i32
  }
}

module attributes {stable_mosaic.version = 11 : i64} {
  func.func @kernel(%arg0: i32, %arg1: i32, %arg2: memref<16x72xbf16, #tpu.memory_space<vmem>>, %arg3: memref<72x256xbf16, #tpu.memory_space<vmem>>, %arg4: memref<16x1xf32, #tpu.memory_space<vmem>>, %arg5: memref<16x256xf32, #tpu.memory_space<vmem>>, %arg6: memref<16x256xf32, #tpu.memory_space<vmem>>) attributes {dimension_semantics = [#tpu.dimension_semantics<parallel>, #tpu.dimension_semantics<parallel>], iteration_bounds = array<i64: 1, 2>, scalar_prefetch = 0 : i64, scratch_operands = 0 : i64, tpu.core_type = #tpu.core_type<tc>, window_params = [{transform_indices = @transform_0, window_bounds = array<i64: 16, 72>}, {transform_indices = @transform_1, window_bounds = array<i64: 72, 256>}, {transform_indices = @transform_2, window_bounds = array<i64: 16, 1>}, {transform_indices = @transform_3, window_bounds = array<i64: 16, 256>}, {transform_indices = @transform_4, window_bounds = array<i64: 16, 256>}]} {
    %c0 = arith.constant 0 : index
    %c0_0 = arith.constant 0 : index
    %0 = vector.load %arg2[%c0, %c0_0] : memref<16x72xbf16, #tpu.memory_space<vmem>>, vector<16x72xbf16>
    %c0_1 = arith.constant 0 : index
    %c0_2 = arith.constant 0 : index
    %1 = vector.load %arg3[%c0_1, %c0_2] : memref<72x256xbf16, #tpu.memory_space<vmem>>, vector<72x256xbf16>
    %cst = arith.constant dense<0.000000e+00> : vector<16x256xf32>
    %2 = tpu.matmul %0, %1, %cst {dimension_numbers = #tpu.dot_dimension_numbers<[1], [0], [0], [1], [0, 0, 1, 1], [], []>} : vector<16x72xbf16>, vector<72x256xbf16>, vector<16x256xf32> -> vector<16x256xf32>
    %c0_3 = arith.constant 0 : index
    %c0_4 = arith.constant 0 : index
    %3 = vector.load %arg4[%c0_3, %c0_4] : memref<16x1xf32, #tpu.memory_space<vmem>>, vector<16x1xf32>
    %4 = vector.broadcast %3 : vector<16x1xf32> to vector<16x256xf32>
    %5 = arith.addf %2, %4 : vector<16x256xf32>
    %c0_5 = arith.constant 0 : index
    %c0_6 = arith.constant 0 : index
    %6 = vector.load %arg5[%c0_5, %c0_6] : memref<16x256xf32, #tpu.memory_space<vmem>>, vector<16x256xf32>
    %7 = arith.addf %5, %6 : vector<16x256xf32>
    %c0_7 = arith.constant 0 : index
    %c0_8 = arith.constant 0 : index
    %8 = vector.load %arg6[%c0_7, %c0_8] : memref<16x256xf32, #tpu.memory_space<vmem>>, vector<16x256xf32>
    tpu.vector_store %arg6[%c0_7, %c0_8], %7 {strides = array<i32>} : memref<16x256xf32, #tpu.memory_space<vmem>>, vector<16x256xf32>,
    return
  }
  func.func @transform_0(%arg0: i32, %arg1: i32) -> (i32, i32) {
    %c0_i32 = arith.constant 0 : i32
    %c0_i32_0 = arith.constant 0 : i32
    return %arg0, %c0_i32 : i32, i32
  }
  func.func @transform_1(%arg0: i32, %arg1: i32) -> (i32, i32) {
    %c0_i32 = arith.constant 0 : i32
    %c0_i32_0 = arith.constant 0 : i32
    return %c0_i32, %arg1 : i32, i32
  }
  func.func @transform_2(%arg0: i32, %arg1: i32) -> (i32, i32) {
    %c0_i32 = arith.constant 0 : i32
    %c0_i32_0 = arith.constant 0 : i32
    return %arg0, %c0_i32 : i32, i32
  }
  func.func @transform_3(%arg0: i32, %arg1: i32) -> (i32, i32) {
    %c0_i32 = arith.constant 0 : i32
    return %arg0, %arg1 : i32, i32
  }
  func.func @transform_4(%arg0: i32, %arg1: i32) -> (i32, i32) {
    %c0_i32 = arith.constant 0 : i32
    return %arg0, %arg1 : i32, i32
  }
}

</mosaic_0001>

<bundles_post_ra>
// kernel: _lambda_.6
= control target key start
LH: loop header
LB: loop body
LE: loop exit
PB: predicated region body
PF: predicated region fallthrough
CT: control target
= control target key end

     0   :  { %s964_s12 = smov 0   ;;  %s966_s13 = smov 0   ;;  %s1113_s0 = inlined_call_operand.vmem [shape: bf16[16,27], index: 0, kind: input, shape index: {}]   ;;  %s1114_s1 = inlined_call_operand.vmem [shape: bf16[27,2048], index: 1, kind: input, shape index: {}]   ;;  %s1115_s2 = inlined_call_operand.vmem [shape: f32[16,1], index: 2, kind: input, shape index: {}]   ;;  %s1116_s3 = inlined_call_operand.vmem [shape: bf16[16,2048], index: 3, kind: output, shape index: {}]  }
   0x1   :  { %s968_s14 = smov 0   ;;  %s970_s15 = smov 0  }
   0x2   :  { %s972_s16 = smov 0  }
   0x3 LB: > { %s22_s17 = sadd.s32 1, %s936_s15  ;;  %s802_s18 = sadd.s32 4294967295, %s940_s16   ;;  %s940_s16 = sphi %s972_s16, %s13_s16   ;;  %s936_s15 = sphi %s970_s15, %s1121_s15   ;;  %s932_s14 = sphi %s968_s14, %s1120_s14   ;;  %s928_s13 = sphi %s966_s13, %s1119_s13   ;;  %s924_s12 = sphi %s964_s12, %s1118_s12  }
   0x4   : > { %p23_p0 = scmp.ge.s32.totalorder %s22_s17, 2  ;;  %p65_p1 = scmp.ne.s32.totalorder %s928_s13, %s924_s12 }
   0x5   : > { %p66_p2 = scmp.eq.s32.totalorder %s940_s16, 0  ;;  %p123_p4 = scmp.eq.s32.totalorder %s802_s18, 1 }
   0x6   : > { %s1123_s17 = smov (%p23_p0, %s22_s17), 0  ;;  %s58_s20 = sadd.s32 1, %s928_s13 }
   0x7   : > { %p67_p3 = por %p66_p2, %p65_p1  ;;  %s55_s19 = ssub.s32 %s936_s15, %s1123_s17 }
   0x8   : > { %p56_p5 = scmp.eq.s32.totalorder %s55_s19, 0  ;;  %p999_p6 = por %p123_p4, %p65_p1 }
   0x9   : > { %p807_p7 = scmp.ge.s32.totalorder %s940_s16, 2 }
   0xa   : > { %s1004_s22 = scalar_select %p56_p5, %s928_s13, %s58_s20  }
   0xb   : > { %163 = sbr.rel (%p807_p7) target bundleno = 30 (0x1e), region = 24 }
  0x12   : > { %166 = sbr.rel (!%p67_p3) target bundleno = 30 (0x1e), region = 28  ;;  %s168_s23 = sand.u32 (%p67_p3), 1, %s928_s13  }
  0x13   : > { %s848_s24 = sshll.u32 (%p67_p3), %s936_s15, 5  ;;  %s808_s25 = sshll.u32 (%p67_p3), %s168_s23, 7 }
  0x14   : > { %s1012_s28 = scalar_lea.vmem (%p67_p3), %s1114_s1, %s848_s24  ;;  %s170_s29 = scalar_lea.vmem (%p67_p3), [#allocation2], %s808_s25 }
  0x15   : > { %v186_v0 = vld [vmem:[%s1012_s28] sm:$0xff] (%p67_p3)  ;;  %v188_v1 = vld [vmem:[%s1012_s28 + $0x8] sm:$0xff] (%p67_p3)  ;;  %v190_v2 = vld [vmem:[%s1012_s28 + $0x10] sm:$0xff] (%p67_p3) }
  0x16   : > { %187 = vst [vmem:[%s170_s29] sm:$0xff] (%p67_p3), %v186_v0  ;;  %189 = vst [vmem:[%s170_s29 + $0x8] sm:$0xff] (%p67_p3), %v188_v1  ;;  %v192_v3 = vld [vmem:[%s1012_s28 + $0x18] sm:$0xff] (%p67_p3)  ;;  %v194_v4 = vld [vmem:[%s1012_s28 + $0x40] sm:$0xff] (%p67_p3) }
  0x17   : > { %191 = vst [vmem:[%s170_s29 + $0x10] sm:$0xff] (%p67_p3), %v190_v2  ;;  %v196_v5 = vld [vmem:[%s1012_s28 + $0x48] sm:$0xff] (%p67_p3)  ;;  %193 = vst [vmem:[%s170_s29 + $0x18] sm:$0xff] (%p67_p3), %v192_v3  ;;  %v198_v6 = vld [vmem:[%s1012_s28 + $0x50] sm:$0xff] (%p67_p3) }
  0x18   : > { %195 = vst [vmem:[%s170_s29 + $0x20] sm:$0xff] (%p67_p3), %v194_v4  ;;  %197 = vst [vmem:[%s170_s29 + $0x28] sm:$0xff] (%p67_p3), %v196_v5  ;;  %v200_v7 = vld [vmem:[%s1012_s28 + $0x58] sm:$0xff] (%p67_p3)  ;;  %v202_v8 = vld [vmem:[%s1012_s28 + $0x80] sm:$0xff] (%p67_p3) }
  0x19   : > { %199 = vst [vmem:[%s170_s29 + $0x30] sm:$0xff] %v198_v6  ;;  %201 = vst [vmem:[%s170_s29 + $0x38] sm:$0xff] %v200_v7  ;;  %v204_v9 = vld [vmem:[%s1012_s28 + $0x88] sm:$0xff]  ;;  %v206_v10 = vld [vmem:[%s1012_s28 + $0x90] sm:$0xff] }
  0x1a   : > { %203 = vst [vmem:[%s170_s29 + $0x40] sm:$0xff] %v202_v8  ;;  %v208_v11 = vld [vmem:[%s1012_s28 + $0x98] sm:$0xff]  ;;  %205 = vst [vmem:[%s170_s29 + $0x48] sm:$0xff] %v204_v9  ;;  %v210_v12 = vld [vmem:[%s1012_s28 + $0xc0] sm:$0xff] }
  0x1b   : > { %207 = vst [vmem:[%s170_s29 + $0x50] sm:$0xff] %v206_v10  ;;  %209 = vst [vmem:[%s170_s29 + $0x58] sm:$0xff] %v208_v11  ;;  %v212_v13 = vld [vmem:[%s1012_s28 + $0xc8] sm:$0xff]  ;;  %v214_v14 = vld [vmem:[%s1012_s28 + $0xd0] sm:$0xff] }
  0x1c   : > { %211 = vst [vmem:[%s170_s29 + $0x60] sm:$0xff] %v210_v12  ;;  %213 = vst [vmem:[%s170_s29 + $0x68] sm:$0xff] %v212_v13  ;;  %v216_v15 = vld [vmem:[%s1012_s28 + $0xd8] sm:$0xff] }
  0x1d   : > { %215 = vst [vmem:[%s170_s29 + $0x70] sm:$0xff] %v214_v14  ;;  %217 = vst [vmem:[%s170_s29 + $0x78] sm:$0xff] %v216_v15 }
  0x1e PF: > { %p811_p8 = scmp.ge.s32.totalorder %s940_s16, 1  ;;  %p222_p9 = scmp.lt.s32.totalorder %s940_s16, 3 }
  0x20   : > { %p223_p10 = pnand %p811_p8, %p222_p9 }
  0x21   : > { %s229_s30 = sand.u32 (!%p223_p10), 1, %s924_s12   ;;  %vm388_vm0 = vcmask (!%p223_p10), 1044480   ;;  %vm389_vm1 = vcmask (!%p223_p10), 1045504   ;;  %v942_v16 = vmov (!%p223_p10), 65535   ;;  %v943_v18 = vmov (!%p223_p10), 0   ;;  %v295_v19 = vld [vmem:[%s1115_s2] sm:$0xff] (!%p223_p10) }
  0x22   : > { %226 = sbr.rel (%p223_p10) target bundleno = 287 (0x11f), region = 51  ;;  %s812_s4 = sshll.u32 (!%p223_p10), %s229_s30, 7  ;;  %v390_v17 = vsel (!%p223_p10), %vm388_vm0, 4294967295, %v942_v16  ;;  %448 = vmatprep.mubr.bf16.mxu0 (!%p223_p10), %v943_v18  ;;  %491 = vmatprep.mubr.bf16.mxu1 (!%p223_p10), %v943_v18  ;;  %v296_v36 = vld [vmem:[%s1115_s2 + $0x8] sm:$0xff] (!%p223_p10)  ;;  %v901_v53 = vld [vmem:[%s1113_s0] sm:$0xff] (!%p223_p10)   ;;  %vm384_vm2 = vcmask (!%p223_p10), 220160  }
  0x23   : > { %900 = vset.pattern.permute.xlu0 (!%p223_p10), %v943_v18  ;;  %s1041_s7 = scalar_lea.vmem (!%p223_p10), [#allocation2], %s812_s4  ;;  %v391_v28 = vsel (!%p223_p10), %vm389_vm1, %v390_v17, 0  ;;  %s813_s18 = sshll.u32 (!%p223_p10), %s229_s30, 6 }
  0x24   : > { %v279_v20 = vld [vmem:[%s1041_s7] sm:$0xff] (!%p223_p10)  ;;  %v280_v22 = vld [vmem:[%s1041_s7 + $0x8] sm:$0xff] (!%p223_p10)  ;;  %299 = vperm.xlu0 (!%p223_p10), %900, %v295_v19   ;;  %v281_v35 = vld [vmem:[%s1041_s7 + $0x10] sm:$0xff] (!%p223_p10)  ;;  %s1074_s12 = scalar_lea.vmem (!%p223_p10), [#allocation3], %s813_s18 }
  0x25   : > { %v283_v21 = vld [vmem:[%s1041_s7 + $0x20] sm:$0xff] (!%p223_p10)  ;;  %v284_v24 = vld [vmem:[%s1041_s7 + $0x28] sm:$0xff] (!%p223_p10)  ;;  %v285_v39 = vld [vmem:[%s1041_s7 + $0x30] sm:$0xff] (!%p223_p10) }
  0x26   : > { %v816_v23 = vcombine.high (!%p223_p10), %v279_v20, %v283_v21  ;;  %v815_v25 = vcombine.low (!%p223_p10), %v279_v20, %v283_v21  ;;  %v287_v26 = vld [vmem:[%s1041_s7 + $0x40] sm:$0xff] (!%p223_p10)  ;;  %v818_v29 = vcombine.high (!%p223_p10), %v280_v22, %v284_v24  ;;  %v817_v30 = vcombine.low (!%p223_p10), %v280_v22, %v284_v24  ;;  %v288_v32 = vld [vmem:[%s1041_s7 + $0x48] sm:$0xff] (!%p223_p10)  ;;  %v282_v40 = vld [vmem:[%s1041_s7 + $0x18] sm:$0xff] (!%p223_p10) }
  0x27   : > { %v291_v27 = vld [vmem:[%s1041_s7 + $0x60] sm:$0x33] (!%p223_p10)  ;;  %v292_v33 = vld [vmem:[%s1041_s7 + $0x68] sm:$0x33] (!%p223_p10)  ;;  %v286_v41 = vld [vmem:[%s1041_s7 + $0x38] sm:$0xff] (!%p223_p10)  ;;  %v820_v49 = vcombine.high (!%p223_p10), %v281_v35, %v285_v39  ;;  %v819_v55 = vcombine.low (!%p223_p10), %v281_v35, %v285_v39 }
  0x28   : > { %v824_v31 = vcombine.high (!%p223_p10), %v287_v26, %v291_v27  ;;  %v823_v34 = vcombine.low (!%p223_p10), %v287_v26, %v291_v27  ;;  %416 = vmatprep.subr.bf16.mxu0 (!%p223_p10), %v816_v23  ;;  %v826_v37 = vcombine.high (!%p223_p10), %v288_v32, %v292_v33  ;;  %v825_v38 = vcombine.low (!%p223_p10), %v288_v32, %v292_v33  ;;  %v289_v44 = vld [vmem:[%s1041_s7 + $0x50] sm:$0xff] (!%p223_p10)  ;;  %v290_v46 = vld [vmem:[%s1041_s7 + $0x58] sm:$0xff] (!%p223_p10) }
  0x29   : > { %459 = vmatprep.subr.bf16.mxu1 %v818_v29  ;;  %417 = vmatpush1.bf16.msra.mxu0 %v815_v25  ;;  %v293_v45 = vld [vmem:[%s1041_s7 + $0x70] sm:$0x33]  ;;  %v294_v50 = vld [vmem:[%s1041_s7 + $0x78] sm:$0x33]  ;;  %v822_v51 = vcombine.high %v282_v40, %v286_v41  ;;  %v821_v57 = vcombine.low %v282_v40, %v286_v41  ;;  %s857_s19 = sshll.u32 (%p999_p6), %s932_s14, 5 }
  0x2a   : > { %v396_v42 = vand.u32 %v824_v31, %v391_v28  ;;  %v393_v43 = vand.u32 %v823_v34, %v391_v28  ;;  %460 = vmatpush1.bf16.msra.mxu1 %v817_v30  ;;  %v402_v47 = vand.u32 %v826_v37, %v391_v28  ;;  %v399_v48 = vand.u32 %v825_v38, %v391_v28  ;;  %s672_s24 = scalar_lea.vmem (%p999_p6), %s1116_s3, %s857_s19 }
  0x2b   : > { %v828_v52 = vcombine.high %v289_v44, %v293_v45  ;;  %v830_v54 = vcombine.high %v290_v46, %v294_v50  ;;  %304 = vperm.xlu0 %900, %v296_v36   ;;  %v827_v56 = vcombine.low %v289_v44, %v293_v45  ;;  %v829_v59 = vcombine.low %v290_v46, %v294_v50 }
  0x2c   : > { %418 = vmatprep.subr.bf16.mxu0 %v396_v42  ;;  %461 = vmatprep.subr.bf16.mxu1 %v402_v47 }
  0x2d   : > { %419 = vmatpush1.bf16.msra.mxu0 %v393_v43  ;;  %v408_v58 = vand.u32 %v828_v52, %v391_v28  ;;  %v414_v60 = vand.u32 %v830_v54, %v391_v28  ;;  %v405_v61 = vand.u32 %v827_v56, %v391_v28  ;;  %v411_v62 = vand.u32 %v829_v59, %v391_v28 }
  0x2e   : > { %462 = vmatpush1.bf16.msra.mxu1 %v399_v48  ;;  %502 = vmatprep.subr.bf16.mxu0 %v820_v49 }
  0x2f   : > { %545 = vmatprep.subr.bf16.mxu1 %v822_v51 }
  0x30   : > { %831 = vmatmul.mubr.msk.bf16.vlgmr.msra.gmra.mrb[0].mxu0 %vm384_vm2, %v901_v53 }
  0x31   : > { %832 = vmatmul.mubr.msk.bf16.vlgmr.msra.gmra.mrb[0].mxu1 %vm384_vm2, %v901_v53  ;;  %503 = vmatpush1.bf16.msra.mxu0 %v819_v55 }
  0x32   : > { %546 = vmatpush1.bf16.msra.mxu1 %v821_v57  ;;  %504 = vmatprep.subr.bf16.mxu0 %v408_v58 }
  0x33   : > { %547 = vmatprep.subr.bf16.mxu1 %v414_v60  ;;  %534 = vmatprep.mubr.bf16.mxu0 %v943_v18 }
  0x34   : > { %577 = vmatprep.mubr.bf16.mxu1 %v943_v18 }
  0x35   : > { %505 = vmatpush1.bf16.msra.mxu0 %v405_v61 }
  0x36   : > { %548 = vmatpush1.bf16.msra.mxu1 %v411_v62 }
  0x38   : > { %833 = vmatmul.mubr.msk.bf16.vlgmr.msra.gmra.mrb[4].mxu0 %vm384_vm2, %v901_v53 }
  0x39   : > { %834 = vmatmul.mubr.msk.bf16.vlgmr.msra.gmra.mrb[4].mxu1 %vm384_vm2, %v901_v53 }
  0xa3   : > { %v300_v63 = vpop.permute.xlu0 %299 }
  0xaa   : > { %v305_v1 = vpop.permute.xlu0 %304 }
 0x103   : > { %v450_v0 = vpop.f32.mrb[0].mxu0 }
 0x104   : > { %v451_v2 = vadd.f32 %v450_v0, %v300_v63  ;;  %v493_v3 = vpop.f32.mrb[0].mxu1  ;;  %v452_v4 = vpop.f32.mrb[1].mxu0 }
 0x105   : > { %v494_v5 = vadd.f32 %v493_v3, %v300_v63  ;;  %v453_v6 = vadd.f32 %v452_v4, %v300_v63  ;;  %v495_v7 = vpop.f32.mrb[1].mxu1  ;;  %v454_v8 = vpop.f32.mrb[2].mxu0 }
 0x106   : > { %v588_v9 = vmax.f32 %v451_v2, 0.0  ;;  %v496_v10 = vadd.f32 %v495_v7, %v300_v63  ;;  %v455_v11 = vadd.f32 %v454_v8, %v305_v1  ;;  %v497_v12 = vpop.f32.mrb[2].mxu1  ;;  %v456_v13 = vpop.f32.mrb[3].mxu0 }
 0x107   : > { %v590_v14 = vmax.f32 %v494_v5, 0.0  ;;  %v589_v15 = vmax.f32 %v453_v6, 0.0  ;;  %v498_v16 = vadd.f32 %v497_v12, %v305_v1  ;;  %v457_v17 = vadd.f32 %v456_v13, %v305_v1  ;;  %v499_v18 = vpop.f32.mrb[3].mxu1 }
 0x108   : > { %v591_v19 = vmax.f32 %v496_v10, 0.0  ;;  %v596_v20 = vmax.f32 %v455_v11, 0.0  ;;  %v500_v21 = vadd.f32 %v499_v18, %v305_v1 }
 0x109   : > { %v849_v22 = vpack.c.bf16 %v589_v15, %v588_v9  ;;  %v598_v23 = vmax.f32 %v498_v16, 0.0  ;;  %v597_v24 = vmax.f32 %v457_v17, 0.0 }
 0x10a   : > { %v850_v25 = vpack.c.bf16 %v591_v19, %v590_v14  ;;  %v599_v26 = vmax.f32 %v500_v21, 0.0 }
 0x10b   : > { %652 = vst [vmem:[%s1074_s12] sm:$0xff] %v849_v22  ;;  %v853_v27 = vpack.c.bf16 %v597_v24, %v596_v20  ;;  %v536_v28 = vpop.f32.mrb[4].mxu0 }
 0x10c   : > { %653 = vst [vmem:[%s1074_s12 + $0x8] sm:$0xff] %v850_v25  ;;  %v854_v29 = vpack.c.bf16 %v599_v26, %v598_v23  ;;  %v537_v30 = vadd.f32 %v536_v28, %v300_v63  ;;  %v579_v31 = vpop.f32.mrb[4].mxu1  ;;  %v538_v32 = vpop.f32.mrb[5].mxu0 }
 0x10d   : > { %656 = vst [vmem:[%s1074_s12 + $0x20] sm:$0xff] %v853_v27  ;;  %v580_v33 = vadd.f32 %v579_v31, %v300_v63  ;;  %v539_v34 = vadd.f32 %v538_v32, %v300_v63  ;;  %v581_v35 = vpop.f32.mrb[5].mxu1  ;;  %v540_v36 = vpop.f32.mrb[6].mxu0 }
 0x10e   : > { %657 = vst [vmem:[%s1074_s12 + $0x28] sm:$0xff] %v854_v29  ;;  %v592_v37 = vmax.f32 %v537_v30, 0.0  ;;  %v582_v38 = vadd.f32 %v581_v35, %v300_v63  ;;  %v541_v39 = vadd.f32 %v540_v36, %v305_v1  ;;  %v583_v40 = vpop.f32.mrb[6].mxu1  ;;  %v542_v41 = vpop.f32.mrb[7].mxu0 }
 0x10f   : > { %v594_v42 = vmax.f32 %v580_v33, 0.0  ;;  %v593_v43 = vmax.f32 %v539_v34, 0.0  ;;  %v584_v44 = vadd.f32 %v583_v40, %v305_v1  ;;  %v543_v45 = vadd.f32 %v542_v41, %v305_v1  ;;  %v585_v46 = vpop.f32.mrb[7].mxu1 }
 0x110   : > { %v595_v47 = vmax.f32 %v582_v38, 0.0  ;;  %v600_v48 = vmax.f32 %v541_v39, 0.0  ;;  %v586_v49 = vadd.f32 %v585_v46, %v305_v1  ;;  %666 = sbr.rel (!%p999_p6) target bundleno = 287 (0x11f), region = 59 }
 0x111   : > { %v851_v50 = vpack.c.bf16 %v593_v43, %v592_v37  ;;  %v602_v51 = vmax.f32 %v584_v44, 0.0  ;;  %v601_v52 = vmax.f32 %v543_v45, 0.0 }
 0x112   : > { %v852_v53 = vpack.c.bf16 %v595_v47, %v594_v42  ;;  %v603_v54 = vmax.f32 %v586_v49, 0.0  ;;  %v685_v57 = vld [vmem:[%s1074_s12] sm:$0xff] (%p999_p6) }
 0x113   : > { %654 = vst [vmem:[%s1074_s12 + $0x10] sm:$0xff] %v851_v50  ;;  %v855_v55 = vpack.c.bf16 %v601_v52, %v600_v48  ;;  %v687_v58 = vld [vmem:[%s1074_s12 + $0x8] sm:$0xff] (%p999_p6)  ;;  %686 = vst [vmem:[%s672_s24] sm:$0xff] (%p999_p6), %v685_v57 }
 0x114   : > { %655 = vst [vmem:[%s1074_s12 + $0x18] sm:$0xff] %v852_v53  ;;  %v856_v56 = vpack.c.bf16 %v603_v54, %v602_v51  ;;  %v693_v61 = vld [vmem:[%s1074_s12 + $0x20] sm:$0xff] (%p999_p6)  ;;  %688 = vst [vmem:[%s672_s24 + $0x8] sm:$0xff] (%p999_p6), %v687_v58 }
 0x115   : > { %658 = vst [vmem:[%s1074_s12 + $0x30] sm:$0xff] %v855_v55  ;;  %v695_v62 = vld [vmem:[%s1074_s12 + $0x28] sm:$0xff] (%p999_p6)  ;;  %694 = vst [vmem:[%s672_s24 + $0x40] sm:$0xff] (%p999_p6), %v693_v61 }
 0x116   : > { %659 = vst [vmem:[%s1074_s12 + $0x38] sm:$0xff] %v856_v56  ;;  %696 = vst [vmem:[%s672_s24 + $0x48] sm:$0xff] (%p999_p6), %v695_v62 }
 0x11a   : > { %v689_v59 = vld [vmem:[%s1074_s12 + $0x10] sm:$0xff] }
 0x11b   : > { %v691_v60 = vld [vmem:[%s1074_s12 + $0x18] sm:$0xff]  ;;  %690 = vst [vmem:[%s672_s24 + $0x10] sm:$0xff] %v689_v59 }
 0x11c   : > { %692 = vst [vmem:[%s672_s24 + $0x18] sm:$0xff] %v691_v60  ;;  %v697_v63 = vld [vmem:[%s1074_s12 + $0x30] sm:$0xff] }
 0x11d   : > { %v699_v0 = vld [vmem:[%s1074_s12 + $0x38] sm:$0xff]  ;;  %698 = vst [vmem:[%s672_s24 + $0x50] sm:$0xff] %v697_v63 }
 0x11e   : > { %700 = vst [vmem:[%s672_s24 + $0x58] sm:$0xff] %v699_v0 }
 0x11f PF: > { %s13_s16 = sadd.s32 1, %s940_s16   ;;  %s1118_s12 = smov %s928_s13 }
 0x120   : > { %p10_p11 = scmp.ge.s32.totalorder %s13_s16, 4   ;;  %s1119_s13 = smov %s1004_s22 }
 0x121   : > { %s1120_s14 = smov %s936_s15  ;;  %s1121_s15 = smov %s1123_s17 }
 0x122   :  { %12 = sbr.rel (!%p10_p11) target bundleno = 3 (0x3), region = 119 }

// kernel: _lambda_.7
= control target key start
LH: loop header
LB: loop body
LE: loop exit
PB: predicated region body
PF: predicated region fallthrough
CT: control target
= control target key end

     0   :  { %s713_s12 = smov 0   ;;  %s715_s13 = smov 0   ;;  %s798_s0 = inlined_call_operand.vmem [shape: bf16[16,72], index: 0, kind: input, shape index: {}]   ;;  %s799_s1 = inlined_call_operand.vmem [shape: bf16[72,512], index: 1, kind: input, shape index: {}]   ;;  %s800_s2 = inlined_call_operand.vmem [shape: f32[16,1], index: 2, kind: input, shape index: {}]   ;;  %s801_s3 = inlined_call_operand.vmem [shape: f32[16,512], index: 3, kind: output, shape index: {}]  }
   0x1   :  { %s717_s14 = smov 0   ;;  %s719_s15 = smov 0  }
   0x2   :  { %s721_s16 = smov 0  }
   0x3 LB: > { %s22_s17 = sadd.s32 1, %s686_s15  ;;  %s563_s18 = sadd.s32 4294967295, %s690_s16   ;;  %s690_s16 = sphi %s721_s16, %s13_s16   ;;  %s686_s15 = sphi %s719_s15, %s806_s15   ;;  %s682_s14 = sphi %s717_s14, %s805_s14   ;;  %s678_s13 = sphi %s715_s13, %s804_s13   ;;  %s674_s12 = sphi %s713_s12, %s803_s12  }
   0x4   : > { %p23_p0 = scmp.ge.s32.totalorder %s22_s17, 2  ;;  %p65_p1 = scmp.ne.s32.totalorder %s678_s13, %s674_s12 }
   0x5   : > { %p66_p2 = scmp.eq.s32.totalorder %s690_s16, 0  ;;  %p123_p4 = scmp.eq.s32.totalorder %s563_s18, 1 }
   0x6   : > { %s808_s17 = smov (%p23_p0, %s22_s17), 0  ;;  %s58_s20 = sadd.s32 1, %s678_s13 }
   0x7   : > { %p67_p3 = por %p66_p2, %p65_p1  ;;  %s55_s19 = ssub.s32 %s686_s15, %s808_s17 }
   0x8   : > { %p56_p5 = scmp.eq.s32.totalorder %s55_s19, 0  ;;  %p748_p6 = por %p123_p4, %p65_p1 }
   0x9   : > { %p568_p7 = scmp.ge.s32.totalorder %s690_s16, 2 }
   0xa   : > { %s753_s22 = scalar_select %p56_p5, %s678_s13, %s58_s20  }
   0xb   : > { %163 = sbr.rel (%p568_p7) target bundleno = 27 (0x1b), region = 24 }
  0x12   : > { %166 = sbr.rel (!%p67_p3) target bundleno = 27 (0x1b), region = 28  ;;  %s168_s23 = sand.u32 (%p67_p3), 1, %s678_s13  }
  0x13   : > { %s591_s24 = sshll.u32 (%p67_p3), %s686_s15, 3  ;;  %s593_s25 = smul.u32 (%p67_p3), 72, %s168_s23 }
  0x14   : > { %s173_s28 = scalar_lea.vmem (%p67_p3), %s799_s1, %s591_s24 }
  0x15   : > { %v217_v0 = vld [vmem:[%s173_s28] sm:$0xff] (%p67_p3)  ;;  %v219_v1 = vld [vmem:[%s173_s28 + $0x10] sm:$0xff] (%p67_p3)  ;;  %s170_s29 = scalar_lea.vmem (%p67_p3), [#allocation2], %s593_s25 }
  0x16   : > { %v221_v2 = vld [vmem:[%s173_s28 + $0x20] sm:$0xff] (%p67_p3)  ;;  %v223_v3 = vld [vmem:[%s173_s28 + $0x30] sm:$0xff] (%p67_p3)  ;;  %218 = vst [vmem:[%s170_s29] sm:$0xff] (%p67_p3), %v217_v0  ;;  %220 = vst [vmem:[%s170_s29 + $0x8] sm:$0xff] (%p67_p3), %v219_v1 }
  0x17   : > { %v225_v4 = vld [vmem:[%s173_s28 + $0x40] sm:$0xff] (%p67_p3)  ;;  %v227_v5 = vld [vmem:[%s173_s28 + $0x50] sm:$0xff] (%p67_p3)  ;;  %222 = vst [vmem:[%s170_s29 + $0x10] sm:$0xff] (%p67_p3), %v221_v2  ;;  %224 = vst [vmem:[%s170_s29 + $0x18] sm:$0xff] (%p67_p3), %v223_v3 }
  0x18   : > { %226 = vst [vmem:[%s170_s29 + $0x20] sm:$0xff] (%p67_p3), %v225_v4  ;;  %228 = vst [vmem:[%s170_s29 + $0x28] sm:$0xff] (%p67_p3), %v227_v5  ;;  %v229_v6 = vld [vmem:[%s173_s28 + $0x60] sm:$0xff] (%p67_p3)  ;;  %v231_v7 = vld [vmem:[%s173_s28 + $0x70] sm:$0xff] (%p67_p3) }
  0x19   : > { %v233_v8 = vld [vmem:[%s173_s28 + $0x80] sm:$0xff]  ;;  %230 = vst [vmem:[%s170_s29 + $0x30] sm:$0xff] %v229_v6  ;;  %232 = vst [vmem:[%s170_s29 + $0x38] sm:$0xff] %v231_v7 }
  0x1a   : > { %234 = vst [vmem:[%s170_s29 + $0x40] sm:$0xff] %v233_v8 }
  0x1b PF: > { %p571_p8 = scmp.ge.s32.totalorder %s690_s16, 1  ;;  %p239_p9 = scmp.lt.s32.totalorder %s690_s16, 3 }
  0x1d   : > { %p240_p10 = pnand %p571_p8, %p239_p9 }
  0x1e   : > { %s246_s30 = sand.u32 (!%p240_p10), 1, %s674_s12   ;;  %v692_v9 = vmov (!%p240_p10), 0   ;;  %v305_v10 = vld [vmem:[%s800_s2] sm:$0xff] (!%p240_p10)  ;;  %v306_v11 = vld [vmem:[%s800_s2 + $0x8] sm:$0xff] (!%p240_p10)  ;;  %vm371_vm0 = vcmask (!%p240_p10), 1043456   ;;  %vm367_vm1 = vcmask (!%p240_p10), 588800  }
  0x1f   : > { %243 = sbr.rel (%p240_p10) target bundleno = 284 (0x11c), region = 66  ;;  %410 = vmatprep.mubr.bf16.mxu0 (!%p240_p10), %v692_v9  ;;  %636 = vset.pattern.permute.xlu0 (!%p240_p10), %v692_v9  ;;  %v651_v24 = vld [vmem:[%s798_s0] sm:$0xff] (!%p240_p10)   ;;  %s572_s18 = sshll.u32 (!%p240_p10), %s246_s30, 5 }
  0x20   : > { %s594_s4 = smul.u32 (!%p240_p10), 72, %s246_s30  ;;  %309 = vperm.xlu0 (!%p240_p10), %636, %v305_v10   ;;  %s277_s19 = scalar_lea.vmem (!%p240_p10), [#allocation3], %s572_s18 }
  0x22   : > { %s248_s9 = scalar_lea.vmem (!%p240_p10), [#allocation2], %s594_s4 }
  0x23   : > { %v637_v12 = vld [vmem:[%s248_s9 + $0x4] ss:$8 sps:$4 sm:$0xff] (!%p240_p10)   ;;  %v639_v13 = vld [vmem:[%s248_s9] ss:$8 sps:$4 sm:$0xff] (!%p240_p10)   ;;  %v640_v14 = vld [vmem:[%s248_s9 + $0x14] ss:$8 sps:$4 sm:$0xff] (!%p240_p10)  }
  0x24   : > { %378 = vmatprep.subr.bf16.mxu0 (!%p240_p10), %v637_v12  ;;  %314 = vperm.xlu0 (!%p240_p10), %636, %v306_v11   ;;  %v642_v15 = vld [vmem:[%s248_s9 + $0x10] ss:$8 sps:$4 sm:$0xff] (!%p240_p10)   ;;  %v643_v16 = vld [vmem:[%s248_s9 + $0x24] ss:$8 sps:$4 sm:$0xff] (!%p240_p10)   ;;  %v645_v17 = vld [vmem:[%s248_s9 + $0x20] ss:$8 sps:$4 sm:$0xff] (!%p240_p10)  }
  0x25   : > { %379 = vmatpush1.bf16.msra.mxu0 (!%p240_p10), %v639_v13  ;;  %v646_v18 = vld [vmem:[%s248_s9 + $0x34] ss:$8 sps:$4 sm:$0xff] (!%p240_p10)   ;;  %v304_v19 = vld [vmem:[%s248_s9 + $0x40] sm:$0xff] (!%p240_p10)  ;;  %v648_v20 = vld [vmem:[%s248_s9 + $0x30] ss:$8 sps:$4 sm:$0xff] (!%p240_p10)  }
  0x26   : > { %380 = vmatprep.subr.bf16.mxu0 %v640_v14  ;;  %v583_v21 = vcombine.high %v304_v19, %v304_v19  ;;  %v582_v22 = vcombine.low %v304_v19, %v304_v19  ;;  %s592_s12 = sshll.u32 (%p748_p6), %s682_s14, 4 }
  0x27   : > { %s441_s24 = scalar_lea.vmem (%p748_p6), %s801_s3, %s592_s12 }
  0x28   : > { %v373_v23 = vsel %vm371_vm0, %v582_v22, 0 }
  0x29   : > { %381 = vmatpush1.bf16.msra.mxu0 %v642_v15 }
  0x2a   : > { %382 = vmatprep.subr.bf16.mxu0 %v643_v16 }
  0x2d   : > { %383 = vmatpush1.bf16.msra.mxu0 %v645_v17 }
  0x2e   : > { %384 = vmatprep.subr.bf16.mxu0 %v646_v18 }
  0x31   : > { %385 = vmatpush1.bf16.msra.mxu0 %v648_v20 }
  0x32   : > { %584 = vmatprep.subr.msk.bf16.mxu0 %vm371_vm0, %v583_v21 }
  0x35   : > { %387 = vmatpush1.bf16.msra.mxu0 %v373_v23 }
  0x38   : > { %585 = vmatmul.mubr.msk.bf16.vlgmr.msra.gmra.mrb[0].mxu0 %vm367_vm1, %v651_v24 }
  0x9f   : > { %v310_v25 = vpop.permute.xlu0 %309 }
  0xa3   : > { %v315_v29 = vpop.permute.xlu0 %314 }
 0x10b   : > { %v412_v26 = vpop.f32.mrb[0].mxu0 }
 0x10c   : > { %v413_v27 = vadd.f32 %v412_v26, %v310_v25  ;;  %v414_v28 = vpop.f32.mrb[1].mxu0 }
 0x10d   : > { %v415_v30 = vadd.f32 %v414_v28, %v310_v25  ;;  %v416_v31 = vpop.f32.mrb[2].mxu0  ;;  %435 = sbr.rel (!%p748_p6) target bundleno = 284 (0x11c), region = 74 }
 0x10e   : > { %v421_v32 = vmax.f32 %v413_v27, 0.0  ;;  %v417_v33 = vadd.f32 %v416_v31, %v315_v29  ;;  %v418_v34 = vpop.f32.mrb[3].mxu0 }
 0x10f   : > { %v422_v35 = vmax.f32 %v415_v30, 0.0  ;;  %v419_v36 = vadd.f32 %v418_v34, %v315_v29 }
 0x110   : > { %425 = vst [vmem:[%s277_s19] sm:$0xff] %v421_v32  ;;  %v423_v37 = vmax.f32 %v417_v33, 0.0 }
 0x111   : > { %426 = vst [vmem:[%s277_s19 + $0x8] sm:$0xff] %v422_v35  ;;  %v424_v38 = vmax.f32 %v419_v36, 0.0 }
 0x112   : > { %427 = vst [vmem:[%s277_s19 + $0x10] sm:$0xff] %v423_v37 }
 0x113   : > { %428 = vst [vmem:[%s277_s19 + $0x18] sm:$0xff] %v424_v38 }
 0x117   : > { %v454_v39 = vld [vmem:[%s277_s19] sm:$0xff] }
 0x118   : > { %v456_v40 = vld [vmem:[%s277_s19 + $0x8] sm:$0xff]  ;;  %455 = vst [vmem:[%s441_s24] sm:$0xff] %v454_v39 }
 0x119   : > { %v458_v41 = vld [vmem:[%s277_s19 + $0x10] sm:$0xff]  ;;  %457 = vst [vmem:[%s441_s24 + $0x8] sm:$0xff] %v456_v40 }
 0x11a   : > { %v460_v42 = vld [vmem:[%s277_s19 + $0x18] sm:$0xff]  ;;  %459 = vst [vmem:[%s441_s24 + $0x20] sm:$0xff] %v458_v41 }
 0x11b   : > { %461 = vst [vmem:[%s441_s24 + $0x28] sm:$0xff] %v460_v42 }
 0x11c PF: > { %s13_s16 = sadd.s32 1, %s690_s16   ;;  %s803_s12 = smov %s678_s13 }
 0x11d   : > { %p10_p11 = scmp.ge.s32.totalorder %s13_s16, 4   ;;  %s804_s13 = smov %s753_s22 }
 0x11e   : > { %s805_s14 = smov %s686_s15  ;;  %s806_s15 = smov %s808_s17 }
 0x11f   :  { %12 = sbr.rel (!%p10_p11) target bundleno = 3 (0x3), region = 134 }

// kernel: _lambda_.8
= control target key start
LH: loop header
LB: loop body
LE: loop exit
PB: predicated region body
PF: predicated region fallthrough
CT: control target
= control target key end

     0   :  { %s740_s12 = smov 0   ;;  %s742_s13 = smov 0   ;;  %s825_s0 = inlined_call_operand.vmem [shape: bf16[16,72], index: 0, kind: input, shape index: {}]   ;;  %s826_s1 = inlined_call_operand.vmem [shape: bf16[72,512], index: 1, kind: input, shape index: {}]   ;;  %s827_s2 = inlined_call_operand.vmem [shape: f32[16,1], index: 2, kind: input, shape index: {}]   ;;  %s828_s3 = inlined_call_operand.vmem [shape: bf16[16,512], index: 3, kind: output, shape index: {}]  }
   0x1   :  { %s744_s14 = smov 0   ;;  %s746_s15 = smov 0  }
   0x2   :  { %s748_s16 = smov 0  }
   0x3 LB: > { %s22_s17 = sadd.s32 1, %s713_s15  ;;  %s586_s18 = sadd.s32 4294967295, %s717_s16   ;;  %s717_s16 = sphi %s748_s16, %s13_s16   ;;  %s713_s15 = sphi %s746_s15, %s833_s15   ;;  %s709_s14 = sphi %s744_s14, %s832_s14   ;;  %s705_s13 = sphi %s742_s13, %s831_s13   ;;  %s701_s12 = sphi %s740_s12, %s830_s12  }
   0x4   : > { %p23_p0 = scmp.ge.s32.totalorder %s22_s17, 2  ;;  %p65_p1 = scmp.ne.s32.totalorder %s705_s13, %s701_s12 }
   0x5   : > { %p66_p2 = scmp.eq.s32.totalorder %s717_s16, 0  ;;  %p123_p4 = scmp.eq.s32.totalorder %s586_s18, 1 }
   0x6   : > { %s835_s17 = smov (%p23_p0, %s22_s17), 0  ;;  %s58_s20 = sadd.s32 1, %s705_s13 }
   0x7   : > { %p67_p3 = por %p66_p2, %p65_p1  ;;  %s55_s19 = ssub.s32 %s713_s15, %s835_s17 }
   0x8   : > { %p56_p5 = scmp.eq.s32.totalorder %s55_s19, 0  ;;  %p775_p6 = por %p123_p4, %p65_p1 }
   0x9   : > { %p591_p7 = scmp.ge.s32.totalorder %s717_s16, 2 }
   0xa   : > { %s780_s22 = scalar_select %p56_p5, %s705_s13, %s58_s20  }
   0xb   : > { %163 = sbr.rel (%p591_p7) target bundleno = 27 (0x1b), region = 24 }
  0x12   : > { %166 = sbr.rel (!%p67_p3) target bundleno = 27 (0x1b), region = 28  ;;  %s168_s23 = sand.u32 (%p67_p3), 1, %s705_s13  }
  0x13   : > { %s616_s24 = sshll.u32 (%p67_p3), %s713_s15, 3  ;;  %s620_s25 = smul.u32 (%p67_p3), 72, %s168_s23 }
  0x14   : > { %s173_s28 = scalar_lea.vmem (%p67_p3), %s826_s1, %s616_s24 }
  0x15   : > { %v217_v0 = vld [vmem:[%s173_s28] sm:$0xff] (%p67_p3)  ;;  %v219_v1 = vld [vmem:[%s173_s28 + $0x10] sm:$0xff] (%p67_p3)  ;;  %s170_s29 = scalar_lea.vmem (%p67_p3), [#allocation2], %s620_s25 }
  0x16   : > { %v221_v2 = vld [vmem:[%s173_s28 + $0x20] sm:$0xff] (%p67_p3)  ;;  %v223_v3 = vld [vmem:[%s173_s28 + $0x30] sm:$0xff] (%p67_p3)  ;;  %218 = vst [vmem:[%s170_s29] sm:$0xff] (%p67_p3), %v217_v0  ;;  %220 = vst [vmem:[%s170_s29 + $0x8] sm:$0xff] (%p67_p3), %v219_v1 }
  0x17   : > { %v225_v4 = vld [vmem:[%s173_s28 + $0x40] sm:$0xff] (%p67_p3)  ;;  %v227_v5 = vld [vmem:[%s173_s28 + $0x50] sm:$0xff] (%p67_p3)  ;;  %222 = vst [vmem:[%s170_s29 + $0x10] sm:$0xff] (%p67_p3), %v221_v2  ;;  %224 = vst [vmem:[%s170_s29 + $0x18] sm:$0xff] (%p67_p3), %v223_v3 }
  0x18   : > { %226 = vst [vmem:[%s170_s29 + $0x20] sm:$0xff] (%p67_p3), %v225_v4  ;;  %228 = vst [vmem:[%s170_s29 + $0x28] sm:$0xff] (%p67_p3), %v227_v5  ;;  %v229_v6 = vld [vmem:[%s173_s28 + $0x60] sm:$0xff] (%p67_p3)  ;;  %v231_v7 = vld [vmem:[%s173_s28 + $0x70] sm:$0xff] (%p67_p3) }
  0x19   : > { %v233_v8 = vld [vmem:[%s173_s28 + $0x80] sm:$0xff]  ;;  %230 = vst [vmem:[%s170_s29 + $0x30] sm:$0xff] %v229_v6  ;;  %232 = vst [vmem:[%s170_s29 + $0x38] sm:$0xff] %v231_v7 }
  0x1a   : > { %234 = vst [vmem:[%s170_s29 + $0x40] sm:$0xff] %v233_v8 }
  0x1b PF: > { %p594_p8 = scmp.ge.s32.totalorder %s717_s16, 1  ;;  %p239_p9 = scmp.lt.s32.totalorder %s717_s16, 3 }
  0x1d   : > { %p240_p10 = pnand %p594_p8, %p239_p9 }
  0x1e   : > { %s246_s30 = sand.u32 (!%p240_p10), 1, %s701_s12   ;;  %v719_v9 = vmov (!%p240_p10), 0   ;;  %v305_v10 = vld [vmem:[%s827_s2] sm:$0xff] (!%p240_p10)  ;;  %v306_v11 = vld [vmem:[%s827_s2 + $0x8] sm:$0xff] (!%p240_p10)  ;;  %vm371_vm0 = vcmask (!%p240_p10), 1043456   ;;  %vm367_vm1 = vcmask (!%p240_p10), 588800  }
  0x1f   : > { %243 = sbr.rel (%p240_p10) target bundleno = 286 (0x11e), region = 66  ;;  %410 = vmatprep.mubr.bf16.mxu0 (!%p240_p10), %v719_v9  ;;  %663 = vset.pattern.permute.xlu0 (!%p240_p10), %v719_v9  ;;  %v678_v24 = vld [vmem:[%s825_s0] sm:$0xff] (!%p240_p10)   ;;  %s595_s18 = sshll.u32 (!%p240_p10), %s246_s30, 4 }
  0x20   : > { %s621_s4 = smul.u32 (!%p240_p10), 72, %s246_s30  ;;  %309 = vperm.xlu0 (!%p240_p10), %663, %v305_v10   ;;  %s277_s19 = scalar_lea.vmem (!%p240_p10), [#allocation3], %s595_s18 }
  0x22   : > { %s248_s9 = scalar_lea.vmem (!%p240_p10), [#allocation2], %s621_s4 }
  0x23   : > { %v664_v12 = vld [vmem:[%s248_s9 + $0x4] ss:$8 sps:$4 sm:$0xff] (!%p240_p10)   ;;  %v666_v13 = vld [vmem:[%s248_s9] ss:$8 sps:$4 sm:$0xff] (!%p240_p10)   ;;  %v667_v14 = vld [vmem:[%s248_s9 + $0x14] ss:$8 sps:$4 sm:$0xff] (!%p240_p10)  }
  0x24   : > { %378 = vmatprep.subr.bf16.mxu0 (!%p240_p10), %v664_v12  ;;  %314 = vperm.xlu0 (!%p240_p10), %663, %v306_v11   ;;  %v669_v15 = vld [vmem:[%s248_s9 + $0x10] ss:$8 sps:$4 sm:$0xff] (!%p240_p10)   ;;  %v670_v16 = vld [vmem:[%s248_s9 + $0x24] ss:$8 sps:$4 sm:$0xff] (!%p240_p10)   ;;  %v672_v17 = vld [vmem:[%s248_s9 + $0x20] ss:$8 sps:$4 sm:$0xff] (!%p240_p10)  }
  0x25   : > { %379 = vmatpush1.bf16.msra.mxu0 (!%p240_p10), %v666_v13  ;;  %v673_v18 = vld [vmem:[%s248_s9 + $0x34] ss:$8 sps:$4 sm:$0xff] (!%p240_p10)   ;;  %v304_v19 = vld [vmem:[%s248_s9 + $0x40] sm:$0xff] (!%p240_p10)  ;;  %v675_v20 = vld [vmem:[%s248_s9 + $0x30] ss:$8 sps:$4 sm:$0xff] (!%p240_p10)  }
  0x26   : > { %380 = vmatprep.subr.bf16.mxu0 %v667_v14  ;;  %v606_v21 = vcombine.high %v304_v19, %v304_v19  ;;  %v605_v22 = vcombine.low %v304_v19, %v304_v19  ;;  %s619_s12 = sshll.u32 (%p775_p6), %s709_s14, 3 }
  0x27   : > { %s451_s24 = scalar_lea.vmem (%p775_p6), %s828_s3, %s619_s12 }
  0x28   : > { %v373_v23 = vsel %vm371_vm0, %v605_v22, 0 }
  0x29   : > { %381 = vmatpush1.bf16.msra.mxu0 %v669_v15 }
  0x2a   : > { %382 = vmatprep.subr.bf16.mxu0 %v670_v16 }
  0x2d   : > { %383 = vmatpush1.bf16.msra.mxu0 %v672_v17 }
  0x2e   : > { %384 = vmatprep.subr.bf16.mxu0 %v673_v18 }
  0x31   : > { %385 = vmatpush1.bf16.msra.mxu0 %v675_v20 }
  0x32   : > { %607 = vmatprep.subr.msk.bf16.mxu0 %vm371_vm0, %v606_v21 }
  0x35   : > { %387 = vmatpush1.bf16.msra.mxu0 %v373_v23 }
  0x38   : > { %608 = vmatmul.mubr.msk.bf16.vlgmr.msra.gmra.mrb[0].mxu0 %vm367_vm1, %v678_v24 }
  0x9f   : > { %v310_v25 = vpop.permute.xlu0 %309 }
  0xa3   : > { %v315_v29 = vpop.permute.xlu0 %314 }
 0x10b   : > { %v412_v26 = vpop.f32.mrb[0].mxu0 }
 0x10c   : > { %v413_v27 = vadd.f32 %v412_v26, %v310_v25  ;;  %v414_v28 = vpop.f32.mrb[1].mxu0 }
 0x10d   : > { %v415_v30 = vadd.f32 %v414_v28, %v310_v25  ;;  %v416_v31 = vpop.f32.mrb[2].mxu0 }
 0x10e   : > { %v421_v32 = vmax.f32 %v413_v27, 0.0  ;;  %v417_v33 = vadd.f32 %v416_v31, %v315_v29  ;;  %v418_v34 = vpop.f32.mrb[3].mxu0 }
 0x10f   : > { %v422_v35 = vmax.f32 %v415_v30, 0.0  ;;  %v419_v36 = vadd.f32 %v418_v34, %v315_v29  ;;  %445 = sbr.rel (!%p775_p6) target bundleno = 286 (0x11e), region = 74 }
 0x110   : > { %v423_v37 = vmax.f32 %v417_v33, 0.0 }
 0x111   : > { %v617_v38 = vpack.c.bf16 %v422_v35, %v421_v32  ;;  %v424_v39 = vmax.f32 %v419_v36, 0.0 }
 0x113   : > { %437 = vst [vmem:[%s277_s19] sm:$0xff] %v617_v38  ;;  %v618_v40 = vpack.c.bf16 %v424_v39, %v423_v37 }
 0x115   : > { %438 = vst [vmem:[%s277_s19 + $0x8] sm:$0xff] %v618_v40 }
 0x11a   : > { %v481_v41 = vld [vmem:[%s277_s19] sm:$0xff] }
 0x11b   : > { %482 = vst [vmem:[%s451_s24] sm:$0xff] %v481_v41 }
 0x11c   : > { %v483_v42 = vld [vmem:[%s277_s19 + $0x8] sm:$0xff] }
 0x11d   : > { %484 = vst [vmem:[%s451_s24 + $0x10] sm:$0xff] %v483_v42 }
 0x11e PF: > { %s13_s16 = sadd.s32 1, %s717_s16   ;;  %s830_s12 = smov %s705_s13 }
 0x11f   : > { %p10_p11 = scmp.ge.s32.totalorder %s13_s16, 4   ;;  %s831_s13 = smov %s780_s22 }
 0x120   : > { %s832_s14 = smov %s713_s15  ;;  %s833_s15 = smov %s835_s17 }
 0x121   :  { %12 = sbr.rel (!%p10_p11) target bundleno = 3 (0x3), region = 149 }

// kernel: _lambda_.9
= control target key start
LH: loop header
LB: loop body
LE: loop exit
PB: predicated region body
PF: predicated region fallthrough
CT: control target
= control target key end

     0   :  { %s832_s15 = smov 0   ;;  %s834_s16 = smov 0   ;;  %s930_s0 = inlined_call_operand.vmem [shape: bf16[16,72], index: 0, kind: input, shape index: {}]   ;;  %s931_s1 = inlined_call_operand.vmem [shape: bf16[72,512], index: 1, kind: input, shape index: {}]   ;;  %s932_s2 = inlined_call_operand.vmem [shape: f32[16,1], index: 2, kind: input, shape index: {}]   ;;  %s933_s3 = inlined_call_operand.vmem [shape: f32[16,512], index: 3, kind: input, shape index: {}]   ;;  %s934_s4 = inlined_call_operand.vmem [shape: f32[16,512], index: 4, kind: output, shape index: {}]  }
   0x1   :  { %s836_s17 = smov 0   ;;  %s838_s18 = smov 0  }
   0x2   :  { %s840_s19 = smov 0  }
   0x3 LB: > { %s23_s20 = sadd.s32 1, %s800_s18  ;;  %s672_s21 = sadd.s32 4294967295, %s804_s19   ;;  %s804_s19 = sphi %s840_s19, %s14_s19   ;;  %s800_s18 = sphi %s838_s18, %s940_s18   ;;  %s796_s17 = sphi %s836_s17, %s939_s17   ;;  %s792_s16 = sphi %s834_s16, %s938_s16   ;;  %s788_s15 = sphi %s832_s15, %s937_s15  }
   0x4   : > { %p24_p0 = scmp.ge.s32.totalorder %s23_s20, 2  ;;  %p66_p1 = scmp.ne.s32.totalorder %s792_s16, %s788_s15 }
   0x5   : > { %p67_p2 = scmp.eq.s32.totalorder %s804_s19, 0  ;;  %p152_p4 = scmp.eq.s32.totalorder %s672_s21, 1 }
   0x6   : > { %s942_s20 = smov (%p24_p0, %s23_s20), 0  ;;  %s59_s24 = sadd.s32 1, %s792_s16 }
   0x7   : > { %p864_p3 = por %p67_p2, %p66_p1  ;;  %s56_s23 = ssub.s32 %s800_s18, %s942_s20 }
   0x8   : > { %p57_p5 = scmp.eq.s32.totalorder %s56_s23, 0  ;;  %p871_p6 = por %p152_p4, %p66_p1 }
   0x9   : > { %p677_p7 = scmp.ge.s32.totalorder %s804_s19, 2 }
   0xa   : > { %s876_s26 = scalar_select %p57_p5, %s792_s16, %s59_s24  }
   0xb   : > { %192 = sbr.rel (%p677_p7) target bundleno = 34 (0x22), region = 24 }
  0x12   : > { %195 = sbr.rel (!%p864_p3) target bundleno = 27 (0x1b), region = 28  ;;  %s197_s27 = sand.u32 (%p864_p3), 1, %s792_s16  }
  0x13   : > { %s704_s28 = sshll.u32 (%p864_p3), %s800_s18, 3  ;;  %s707_s29 = smul.u32 (%p864_p3), 72, %s197_s27 }
  0x14   : > { %s202_s6 = scalar_lea.vmem (%p864_p3), %s931_s1, %s704_s28 }
  0x15   : > { %v246_v0 = vld [vmem:[%s202_s6] sm:$0xff] (%p864_p3)  ;;  %v248_v1 = vld [vmem:[%s202_s6 + $0x10] sm:$0xff] (%p864_p3)  ;;  %s199_s7 = scalar_lea.vmem (%p864_p3), [#allocation2], %s707_s29 }
  0x16   : > { %v250_v2 = vld [vmem:[%s202_s6 + $0x20] sm:$0xff] (%p864_p3)  ;;  %v252_v3 = vld [vmem:[%s202_s6 + $0x30] sm:$0xff] (%p864_p3)  ;;  %247 = vst [vmem:[%s199_s7] sm:$0xff] (%p864_p3), %v246_v0  ;;  %249 = vst [vmem:[%s199_s7 + $0x8] sm:$0xff] (%p864_p3), %v248_v1 }
  0x17   : > { %v254_v4 = vld [vmem:[%s202_s6 + $0x40] sm:$0xff] (%p864_p3)  ;;  %v256_v5 = vld [vmem:[%s202_s6 + $0x50] sm:$0xff] (%p864_p3)  ;;  %251 = vst [vmem:[%s199_s7 + $0x10] sm:$0xff] (%p864_p3), %v250_v2  ;;  %253 = vst [vmem:[%s199_s7 + $0x18] sm:$0xff] (%p864_p3), %v252_v3 }
  0x18   : > { %255 = vst [vmem:[%s199_s7 + $0x20] sm:$0xff] (%p864_p3), %v254_v4  ;;  %257 = vst [vmem:[%s199_s7 + $0x28] sm:$0xff] (%p864_p3), %v256_v5  ;;  %v258_v6 = vld [vmem:[%s202_s6 + $0x60] sm:$0xff] (%p864_p3)  ;;  %v260_v7 = vld [vmem:[%s202_s6 + $0x70] sm:$0xff] (%p864_p3) }
  0x19   : > { %v262_v8 = vld [vmem:[%s202_s6 + $0x80] sm:$0xff]  ;;  %259 = vst [vmem:[%s199_s7 + $0x30] sm:$0xff] %v258_v6  ;;  %261 = vst [vmem:[%s199_s7 + $0x38] sm:$0xff] %v260_v7 }
  0x1a   : > { %263 = vst [vmem:[%s199_s7 + $0x40] sm:$0xff] %v262_v8 }
  0x1b PF: > { %269 = sbr.rel (!%p864_p3) target bundleno = 34 (0x22), region = 66  ;;  %s271_s8 = sand.u32 (%p864_p3), 1, %s792_s16  }
  0x1c   : > { %s705_s9 = sshll.u32 (%p864_p3), %s800_s18, 4  ;;  %s680_s10 = sshll.u32 (%p864_p3), %s271_s8, 5 }
  0x1d   : > { %s279_s13 = scalar_lea.vmem (%p864_p3), %s933_s3, %s705_s9  ;;  %s273_s14 = scalar_lea.vmem (%p864_p3), [#allocation3], %s680_s10 }
  0x1e   : > { %v292_v9 = vld [vmem:[%s279_s13] sm:$0xff] (%p864_p3)  ;;  %v294_v10 = vld [vmem:[%s279_s13 + $0x8] sm:$0xff] (%p864_p3) }
  0x1f   : > { %v296_v11 = vld [vmem:[%s279_s13 + $0x20] sm:$0xff] (%p864_p3)  ;;  %293 = vst [vmem:[%s273_s14] sm:$0xff] (%p864_p3), %v292_v9  ;;  %295 = vst [vmem:[%s273_s14 + $0x8] sm:$0xff] (%p864_p3), %v294_v10  ;;  %v298_v12 = vld [vmem:[%s279_s13 + $0x28] sm:$0xff] (%p864_p3) }
  0x20   : > { %297 = vst [vmem:[%s273_s14 + $0x10] sm:$0xff] (%p864_p3), %v296_v11  ;;  %299 = vst [vmem:[%s273_s14 + $0x18] sm:$0xff] (%p864_p3), %v298_v12 }
  0x22 PF: > { %p683_p8 = scmp.ge.s32.totalorder %s804_s19, 1  ;;  %p304_p9 = scmp.lt.s32.totalorder %s804_s19, 3 }
  0x24   : > { %p305_p10 = pnand %p683_p8, %p304_p9 }
  0x25   : > { %s311_s21 = sand.u32 (!%p305_p10), 1, %s788_s15   ;;  %v806_v13 = vmov (!%p305_p10), 0   ;;  %v385_v14 = vld [vmem:[%s932_s2] sm:$0xff] (!%p305_p10)  ;;  %v386_v15 = vld [vmem:[%s932_s2 + $0x8] sm:$0xff] (!%p305_p10)  ;;  %vm451_vm0 = vcmask (!%p305_p10), 1043456   ;;  %vm447_vm1 = vcmask (!%p305_p10), 588800  }
  0x26   : > { %308 = sbr.rel (%p305_p10) target bundleno = 293 (0x125), region = 89  ;;  %490 = vmatprep.mubr.bf16.mxu0 (!%p305_p10), %v806_v13  ;;  %750 = vset.pattern.permute.xlu0 (!%p305_p10), %v806_v13  ;;  %v765_v28 = vld [vmem:[%s930_s0] sm:$0xff] (!%p305_p10)   ;;  %s684_s6 = sshll.u32 (!%p305_p10), %s311_s21, 5 }
  0x27   : > { %s708_s22 = smul.u32 (!%p305_p10), 72, %s311_s21  ;;  %389 = vperm.xlu0 (!%p305_p10), %750, %v385_v14   ;;  %s320_s7 = scalar_lea.vmem (!%p305_p10), [#allocation3], %s684_s6 }
  0x28   : > { %v501_v31 = vld [vmem:[%s320_s7] sm:$0xff] (!%p305_p10)  ;;  %v502_v34 = vld [vmem:[%s320_s7 + $0x8] sm:$0xff] (!%p305_p10)  ;;  %v503_v38 = vld [vmem:[%s320_s7 + $0x10] sm:$0xff] (!%p305_p10)  ;;  %s355_s15 = scalar_lea.vmem (!%p305_p10), [#allocation4], %s684_s6 }
  0x29   : > { %s313_s29 = scalar_lea.vmem (!%p305_p10), [#allocation2], %s708_s22  ;;  %v504_v42 = vld [vmem:[%s320_s7 + $0x18] sm:$0xff] (!%p305_p10) }
  0x2a   : > { %v751_v16 = vld [vmem:[%s313_s29 + $0x4] ss:$8 sps:$4 sm:$0xff] (!%p305_p10)   ;;  %v753_v17 = vld [vmem:[%s313_s29] ss:$8 sps:$4 sm:$0xff] (!%p305_p10)   ;;  %v754_v18 = vld [vmem:[%s313_s29 + $0x14] ss:$8 sps:$4 sm:$0xff] (!%p305_p10)  }
  0x2b   : > { %458 = vmatprep.subr.bf16.mxu0 (!%p305_p10), %v751_v16  ;;  %394 = vperm.xlu0 (!%p305_p10), %750, %v386_v15   ;;  %v756_v19 = vld [vmem:[%s313_s29 + $0x10] ss:$8 sps:$4 sm:$0xff] (!%p305_p10)   ;;  %v757_v20 = vld [vmem:[%s313_s29 + $0x24] ss:$8 sps:$4 sm:$0xff] (!%p305_p10)   ;;  %v759_v21 = vld [vmem:[%s313_s29 + $0x20] ss:$8 sps:$4 sm:$0xff] (!%p305_p10)  }
  0x2c   : > { %459 = vmatpush1.bf16.msra.mxu0 (!%p305_p10), %v753_v17  ;;  %v760_v22 = vld [vmem:[%s313_s29 + $0x34] ss:$8 sps:$4 sm:$0xff] (!%p305_p10)   ;;  %v384_v23 = vld [vmem:[%s313_s29 + $0x40] sm:$0xff] (!%p305_p10)  ;;  %v762_v24 = vld [vmem:[%s313_s29 + $0x30] ss:$8 sps:$4 sm:$0xff] (!%p305_p10)  }
  0x2d   : > { %460 = vmatprep.subr.bf16.mxu0 %v754_v18  ;;  %v696_v25 = vcombine.high %v384_v23, %v384_v23  ;;  %v695_v26 = vcombine.low %v384_v23, %v384_v23  ;;  %s706_s8 = sshll.u32 (%p871_p6), %s796_s17, 4 }
  0x2e   : > { %s529_s11 = scalar_lea.vmem (%p871_p6), %s934_s4, %s706_s8 }
  0x2f   : > { %v453_v27 = vsel %vm451_vm0, %v695_v26, 0 }
  0x30   : > { %461 = vmatpush1.bf16.msra.mxu0 %v756_v19 }
  0x31   : > { %462 = vmatprep.subr.bf16.mxu0 %v757_v20 }
  0x34   : > { %463 = vmatpush1.bf16.msra.mxu0 %v759_v21 }
  0x35   : > { %464 = vmatprep.subr.bf16.mxu0 %v760_v22 }
  0x38   : > { %465 = vmatpush1.bf16.msra.mxu0 %v762_v24 }
  0x39   : > { %697 = vmatprep.subr.msk.bf16.mxu0 %vm451_vm0, %v696_v25 }
  0x3c   : > { %467 = vmatpush1.bf16.msra.mxu0 %v453_v27 }
  0x3f   : > { %698 = vmatmul.mubr.msk.bf16.vlgmr.msra.gmra.mrb[0].mxu0 %vm447_vm1, %v765_v28 }
  0xa6   : > { %v390_v29 = vpop.permute.xlu0 %389 }
  0xaa   : > { %v395_v35 = vpop.permute.xlu0 %394 }
 0x112   : > { %v492_v30 = vpop.f32.mrb[0].mxu0 }
 0x113   : > { %v493_v32 = vadd.f32 %v492_v30, %v390_v29  ;;  %v494_v33 = vpop.f32.mrb[1].mxu0 }
 0x114   : > { %v495_v36 = vadd.f32 %v494_v33, %v390_v29  ;;  %v496_v37 = vpop.f32.mrb[2].mxu0 }
 0x115   : > { %v505_v39 = vadd.f32 %v501_v31, %v493_v32  ;;  %v497_v40 = vadd.f32 %v496_v37, %v395_v35  ;;  %v498_v41 = vpop.f32.mrb[3].mxu0 }
 0x116   : > { %v506_v43 = vadd.f32 %v502_v34, %v495_v36  ;;  %v499_v44 = vadd.f32 %v498_v41, %v395_v35  ;;  %523 = sbr.rel (!%p871_p6) target bundleno = 293 (0x125), region = 101 }
 0x117   : > { %v509_v45 = vmax.f32 %v505_v39, 0.0  ;;  %v507_v46 = vadd.f32 %v503_v38, %v497_v40 }
 0x118   : > { %v510_v47 = vmax.f32 %v506_v43, 0.0  ;;  %v508_v48 = vadd.f32 %v504_v42, %v499_v44 }
 0x119   : > { %513 = vst [vmem:[%s355_s15] sm:$0xff] %v509_v45  ;;  %v511_v49 = vmax.f32 %v507_v46, 0.0 }
 0x11a   : > { %514 = vst [vmem:[%s355_s15 + $0x8] sm:$0xff] %v510_v47  ;;  %v512_v50 = vmax.f32 %v508_v48, 0.0 }
 0x11b   : > { %515 = vst [vmem:[%s355_s15 + $0x10] sm:$0xff] %v511_v49 }
 0x11c   : > { %516 = vst [vmem:[%s355_s15 + $0x18] sm:$0xff] %v512_v50 }
 0x120   : > { %v542_v51 = vld [vmem:[%s355_s15] sm:$0xff] }
 0x121   : > { %v544_v52 = vld [vmem:[%s355_s15 + $0x8] sm:$0xff]  ;;  %543 = vst [vmem:[%s529_s11] sm:$0xff] %v542_v51 }
 0x122   : > { %v546_v53 = vld [vmem:[%s355_s15 + $0x10] sm:$0xff]  ;;  %545 = vst [vmem:[%s529_s11 + $0x8] sm:$0xff] %v544_v52 }
 0x123   : > { %v548_v54 = vld [vmem:[%s355_s15 + $0x18] sm:$0xff]  ;;  %547 = vst [vmem:[%s529_s11 + $0x20] sm:$0xff] %v546_v53 }
 0x124   : > { %549 = vst [vmem:[%s529_s11 + $0x28] sm:$0xff] %v548_v54 }
 0x125 PF: > { %s14_s19 = sadd.s32 1, %s804_s19   ;;  %s937_s15 = smov %s792_s16 }
 0x126   : > { %p11_p11 = scmp.ge.s32.totalorder %s14_s19, 4   ;;  %s938_s16 = smov %s876_s26 }
 0x127   : > { %s939_s17 = smov %s800_s18  ;;  %s940_s18 = smov %s942_s20 }
 0x128   :  { %13 = sbr.rel (!%p11_p11) target bundleno = 3 (0x3), region = 169 }

// kernel: _lambda_.11
= control target key start
LH: loop header
LB: loop body
LE: loop exit
PB: predicated region body
PF: predicated region fallthrough
CT: control target
= control target key end

     0   :  { %s828_s15 = smov 0   ;;  %s830_s16 = smov 0   ;;  %s926_s0 = inlined_call_operand.vmem [shape: bf16[16,72], index: 0, kind: input, shape index: {}]   ;;  %s927_s1 = inlined_call_operand.vmem [shape: bf16[72,512], index: 1, kind: input, shape index: {}]   ;;  %s928_s2 = inlined_call_operand.vmem [shape: f32[16,1], index: 2, kind: input, shape index: {}]   ;;  %s929_s3 = inlined_call_operand.vmem [shape: f32[16,512], index: 3, kind: input, shape index: {}]   ;;  %s930_s4 = inlined_call_operand.vmem [shape: f32[16,512], index: 4, kind: output, shape index: {}]  }
   0x1   :  { %s832_s17 = smov 0   ;;  %s834_s18 = smov 0  }
   0x2   :  { %s836_s19 = smov 0  }
   0x3 LB: > { %s23_s20 = sadd.s32 1, %s796_s18  ;;  %s668_s21 = sadd.s32 4294967295, %s800_s19   ;;  %s800_s19 = sphi %s836_s19, %s14_s19   ;;  %s796_s18 = sphi %s834_s18, %s936_s18   ;;  %s792_s17 = sphi %s832_s17, %s935_s17   ;;  %s788_s16 = sphi %s830_s16, %s934_s16   ;;  %s784_s15 = sphi %s828_s15, %s933_s15  }
   0x4   : > { %p24_p0 = scmp.ge.s32.totalorder %s23_s20, 2  ;;  %p66_p1 = scmp.ne.s32.totalorder %s788_s16, %s784_s15 }
   0x5   : > { %p67_p2 = scmp.eq.s32.totalorder %s800_s19, 0  ;;  %p152_p4 = scmp.eq.s32.totalorder %s668_s21, 1 }
   0x6   : > { %s938_s20 = smov (%p24_p0, %s23_s20), 0  ;;  %s59_s24 = sadd.s32 1, %s788_s16 }
   0x7   : > { %p860_p3 = por %p67_p2, %p66_p1  ;;  %s56_s23 = ssub.s32 %s796_s18, %s938_s20 }
   0x8   : > { %p57_p5 = scmp.eq.s32.totalorder %s56_s23, 0  ;;  %p867_p6 = por %p152_p4, %p66_p1 }
   0x9   : > { %p673_p7 = scmp.ge.s32.totalorder %s800_s19, 2 }
   0xa   : > { %s872_s26 = scalar_select %p57_p5, %s788_s16, %s59_s24  }
   0xb   : > { %192 = sbr.rel (%p673_p7) target bundleno = 34 (0x22), region = 24 }
  0x12   : > { %195 = sbr.rel (!%p860_p3) target bundleno = 27 (0x1b), region = 28  ;;  %s197_s27 = sand.u32 (%p860_p3), 1, %s788_s16  }
  0x13   : > { %s700_s28 = sshll.u32 (%p860_p3), %s796_s18, 3  ;;  %s703_s29 = smul.u32 (%p860_p3), 72, %s197_s27 }
  0x14   : > { %s202_s6 = scalar_lea.vmem (%p860_p3), %s927_s1, %s700_s28 }
  0x15   : > { %v246_v0 = vld [vmem:[%s202_s6] sm:$0xff] (%p860_p3)  ;;  %v248_v1 = vld [vmem:[%s202_s6 + $0x10] sm:$0xff] (%p860_p3)  ;;  %s199_s7 = scalar_lea.vmem (%p860_p3), [#allocation2], %s703_s29 }
  0x16   : > { %v250_v2 = vld [vmem:[%s202_s6 + $0x20] sm:$0xff] (%p860_p3)  ;;  %v252_v3 = vld [vmem:[%s202_s6 + $0x30] sm:$0xff] (%p860_p3)  ;;  %247 = vst [vmem:[%s199_s7] sm:$0xff] (%p860_p3), %v246_v0  ;;  %249 = vst [vmem:[%s199_s7 + $0x8] sm:$0xff] (%p860_p3), %v248_v1 }
  0x17   : > { %v254_v4 = vld [vmem:[%s202_s6 + $0x40] sm:$0xff] (%p860_p3)  ;;  %v256_v5 = vld [vmem:[%s202_s6 + $0x50] sm:$0xff] (%p860_p3)  ;;  %251 = vst [vmem:[%s199_s7 + $0x10] sm:$0xff] (%p860_p3), %v250_v2  ;;  %253 = vst [vmem:[%s199_s7 + $0x18] sm:$0xff] (%p860_p3), %v252_v3 }
  0x18   : > { %255 = vst [vmem:[%s199_s7 + $0x20] sm:$0xff] (%p860_p3), %v254_v4  ;;  %257 = vst [vmem:[%s199_s7 + $0x28] sm:$0xff] (%p860_p3), %v256_v5  ;;  %v258_v6 = vld [vmem:[%s202_s6 + $0x60] sm:$0xff] (%p860_p3)  ;;  %v260_v7 = vld [vmem:[%s202_s6 + $0x70] sm:$0xff] (%p860_p3) }
  0x19   : > { %v262_v8 = vld [vmem:[%s202_s6 + $0x80] sm:$0xff]  ;;  %259 = vst [vmem:[%s199_s7 + $0x30] sm:$0xff] %v258_v6  ;;  %261 = vst [vmem:[%s199_s7 + $0x38] sm:$0xff] %v260_v7 }
  0x1a   : > { %263 = vst [vmem:[%s199_s7 + $0x40] sm:$0xff] %v262_v8 }
  0x1b PF: > { %269 = sbr.rel (!%p860_p3) target bundleno = 34 (0x22), region = 66  ;;  %s271_s8 = sand.u32 (%p860_p3), 1, %s788_s16  }
  0x1c   : > { %s701_s9 = sshll.u32 (%p860_p3), %s796_s18, 4  ;;  %s676_s10 = sshll.u32 (%p860_p3), %s271_s8, 5 }
  0x1d   : > { %s279_s13 = scalar_lea.vmem (%p860_p3), %s929_s3, %s701_s9  ;;  %s273_s14 = scalar_lea.vmem (%p860_p3), [#allocation3], %s676_s10 }
  0x1e   : > { %v292_v9 = vld [vmem:[%s279_s13] sm:$0xff] (%p860_p3)  ;;  %v294_v10 = vld [vmem:[%s279_s13 + $0x8] sm:$0xff] (%p860_p3) }
  0x1f   : > { %v296_v11 = vld [vmem:[%s279_s13 + $0x20] sm:$0xff] (%p860_p3)  ;;  %293 = vst [vmem:[%s273_s14] sm:$0xff] (%p860_p3), %v292_v9  ;;  %295 = vst [vmem:[%s273_s14 + $0x8] sm:$0xff] (%p860_p3), %v294_v10  ;;  %v298_v12 = vld [vmem:[%s279_s13 + $0x28] sm:$0xff] (%p860_p3) }
  0x20   : > { %297 = vst [vmem:[%s273_s14 + $0x10] sm:$0xff] (%p860_p3), %v296_v11  ;;  %299 = vst [vmem:[%s273_s14 + $0x18] sm:$0xff] (%p860_p3), %v298_v12 }
  0x22 PF: > { %p679_p8 = scmp.ge.s32.totalorder %s800_s19, 1  ;;  %p304_p9 = scmp.lt.s32.totalorder %s800_s19, 3 }
  0x24   : > { %p305_p10 = pnand %p679_p8, %p304_p9 }
  0x25   : > { %s311_s21 = sand.u32 (!%p305_p10), 1, %s784_s15   ;;  %v802_v13 = vmov (!%p305_p10), 0   ;;  %v385_v14 = vld [vmem:[%s928_s2] sm:$0xff] (!%p305_p10)  ;;  %v386_v15 = vld [vmem:[%s928_s2 + $0x8] sm:$0xff] (!%p305_p10)  ;;  %vm451_vm0 = vcmask (!%p305_p10), 1043456   ;;  %vm447_vm1 = vcmask (!%p305_p10), 588800  }
  0x26   : > { %308 = sbr.rel (%p305_p10) target bundleno = 291 (0x123), region = 89  ;;  %490 = vmatprep.mubr.bf16.mxu0 (!%p305_p10), %v802_v13  ;;  %746 = vset.pattern.permute.xlu0 (!%p305_p10), %v802_v13  ;;  %v761_v28 = vld [vmem:[%s926_s0] sm:$0xff] (!%p305_p10)   ;;  %s680_s6 = sshll.u32 (!%p305_p10), %s311_s21, 5 }
  0x27   : > { %s704_s22 = smul.u32 (!%p305_p10), 72, %s311_s21  ;;  %389 = vperm.xlu0 (!%p305_p10), %746, %v385_v14   ;;  %s320_s7 = scalar_lea.vmem (!%p305_p10), [#allocation3], %s680_s6 }
  0x28   : > { %v501_v31 = vld [vmem:[%s320_s7] sm:$0xff] (!%p305_p10)  ;;  %v502_v34 = vld [vmem:[%s320_s7 + $0x8] sm:$0xff] (!%p305_p10)  ;;  %v503_v38 = vld [vmem:[%s320_s7 + $0x10] sm:$0xff] (!%p305_p10)  ;;  %s355_s8 = scalar_lea.vmem (!%p305_p10), [#allocation4], %s680_s6 }
  0x29   : > { %s313_s29 = scalar_lea.vmem (!%p305_p10), [#allocation2], %s704_s22  ;;  %v504_v42 = vld [vmem:[%s320_s7 + $0x18] sm:$0xff] (!%p305_p10) }
  0x2a   : > { %v747_v16 = vld [vmem:[%s313_s29 + $0x4] ss:$8 sps:$4 sm:$0xff] (!%p305_p10)   ;;  %v749_v17 = vld [vmem:[%s313_s29] ss:$8 sps:$4 sm:$0xff] (!%p305_p10)   ;;  %v750_v18 = vld [vmem:[%s313_s29 + $0x14] ss:$8 sps:$4 sm:$0xff] (!%p305_p10)  }
  0x2b   : > { %458 = vmatprep.subr.bf16.mxu0 (!%p305_p10), %v747_v16  ;;  %394 = vperm.xlu0 (!%p305_p10), %746, %v386_v15   ;;  %v752_v19 = vld [vmem:[%s313_s29 + $0x10] ss:$8 sps:$4 sm:$0xff] (!%p305_p10)   ;;  %v753_v20 = vld [vmem:[%s313_s29 + $0x24] ss:$8 sps:$4 sm:$0xff] (!%p305_p10)   ;;  %v755_v21 = vld [vmem:[%s313_s29 + $0x20] ss:$8 sps:$4 sm:$0xff] (!%p305_p10)  }
  0x2c   : > { %459 = vmatpush1.bf16.msra.mxu0 (!%p305_p10), %v749_v17  ;;  %v756_v22 = vld [vmem:[%s313_s29 + $0x34] ss:$8 sps:$4 sm:$0xff] (!%p305_p10)   ;;  %v384_v23 = vld [vmem:[%s313_s29 + $0x40] sm:$0xff] (!%p305_p10)  ;;  %v758_v24 = vld [vmem:[%s313_s29 + $0x30] ss:$8 sps:$4 sm:$0xff] (!%p305_p10)  }
  0x2d   : > { %460 = vmatprep.subr.bf16.mxu0 %v750_v18  ;;  %v692_v25 = vcombine.high %v384_v23, %v384_v23  ;;  %v691_v26 = vcombine.low %v384_v23, %v384_v23  ;;  %s702_s15 = sshll.u32 (%p867_p6), %s792_s17, 4 }
  0x2e   : > { %s525_s11 = scalar_lea.vmem (%p867_p6), %s930_s4, %s702_s15 }
  0x2f   : > { %v453_v27 = vsel %vm451_vm0, %v691_v26, 0 }
  0x30   : > { %461 = vmatpush1.bf16.msra.mxu0 %v752_v19 }
  0x31   : > { %462 = vmatprep.subr.bf16.mxu0 %v753_v20 }
  0x34   : > { %463 = vmatpush1.bf16.msra.mxu0 %v755_v21 }
  0x35   : > { %464 = vmatprep.subr.bf16.mxu0 %v756_v22 }
  0x38   : > { %465 = vmatpush1.bf16.msra.mxu0 %v758_v24 }
  0x39   : > { %693 = vmatprep.subr.msk.bf16.mxu0 %vm451_vm0, %v692_v25 }
  0x3c   : > { %467 = vmatpush1.bf16.msra.mxu0 %v453_v27 }
  0x3f   : > { %694 = vmatmul.mubr.msk.bf16.vlgmr.msra.gmra.mrb[0].mxu0 %vm447_vm1, %v761_v28 }
  0xa6   : > { %v390_v29 = vpop.permute.xlu0 %389 }
  0xaa   : > { %v395_v35 = vpop.permute.xlu0 %394 }
 0x112   : > { %v492_v30 = vpop.f32.mrb[0].mxu0 }
 0x113   : > { %v493_v32 = vadd.f32 %v492_v30, %v390_v29  ;;  %v494_v33 = vpop.f32.mrb[1].mxu0 }
 0x114   : > { %v495_v36 = vadd.f32 %v494_v33, %v390_v29  ;;  %v496_v37 = vpop.f32.mrb[2].mxu0  ;;  %519 = sbr.rel (!%p867_p6) target bundleno = 291 (0x123), region = 101 }
 0x115   : > { %v505_v39 = vadd.f32 %v501_v31, %v493_v32  ;;  %v497_v40 = vadd.f32 %v496_v37, %v395_v35  ;;  %v498_v41 = vpop.f32.mrb[3].mxu0 }
 0x116   : > { %v506_v43 = vadd.f32 %v502_v34, %v495_v36  ;;  %v499_v44 = vadd.f32 %v498_v41, %v395_v35 }
 0x117   : > { %509 = vst [vmem:[%s355_s8] sm:$0xff] %v505_v39  ;;  %v507_v45 = vadd.f32 %v503_v38, %v497_v40 }
 0x118   : > { %510 = vst [vmem:[%s355_s8 + $0x8] sm:$0xff] %v506_v43  ;;  %v508_v46 = vadd.f32 %v504_v42, %v499_v44 }
 0x119   : > { %511 = vst [vmem:[%s355_s8 + $0x10] sm:$0xff] %v507_v45 }
 0x11a   : > { %512 = vst [vmem:[%s355_s8 + $0x18] sm:$0xff] %v508_v46 }
 0x11e   : > { %v538_v47 = vld [vmem:[%s355_s8] sm:$0xff] }
 0x11f   : > { %v540_v48 = vld [vmem:[%s355_s8 + $0x8] sm:$0xff]  ;;  %539 = vst [vmem:[%s525_s11] sm:$0xff] %v538_v47 }
 0x120   : > { %v542_v49 = vld [vmem:[%s355_s8 + $0x10] sm:$0xff]  ;;  %541 = vst [vmem:[%s525_s11 + $0x8] sm:$0xff] %v540_v48 }
 0x121   : > { %v544_v50 = vld [vmem:[%s355_s8 + $0x18] sm:$0xff]  ;;  %543 = vst [vmem:[%s525_s11 + $0x20] sm:$0xff] %v542_v49 }
 0x122   : > { %545 = vst [vmem:[%s525_s11 + $0x28] sm:$0xff] %v544_v50 }
 0x123 PF: > { %s14_s19 = sadd.s32 1, %s800_s19   ;;  %s933_s15 = smov %s788_s16 }
 0x124   : > { %p11_p11 = scmp.ge.s32.totalorder %s14_s19, 4   ;;  %s934_s16 = smov %s872_s26 }
 0x125   : > { %s935_s17 = smov %s796_s18  ;;  %s936_s18 = smov %s938_s20 }
 0x126   :  { %13 = sbr.rel (!%p11_p11) target bundleno = 3 (0x3), region = 169 }

</bundles_post_ra>
